<compile_context>
chip_gen: v6e
topology: v6e:2x2x1
jax: 0.10.0
libtpu: 0.0.40
codegen_flags: <defaults>
</compile_context>

<pallas_src>
import functools

import jax
import jax.numpy as jnp
from jax import lax
from jax.experimental import pallas as pl
from jax.experimental.pallas import tpu as pltpu


def _round_up(v, m):
    return (v + m - 1) // m * m


def _resample_kernel(idx_ref, w_ref, x_ref, o_ref, *, interp, w_out,
                     tile_in, tile_out, additive):
    j = pl.program_id(0)          # output-column tile (parallel)
    k = pl.program_id(1)          # input-pixel tile (reduction, innermost)

    @pl.when(k == 0)
    def _():
        o_ref[...] = jnp.zeros_like(o_ref)

    idx00 = idx_ref[...]          # (tile_in, 1) int32 flattened corner-00 index
    jj = lax.broadcasted_iota(jnp.int32, (tile_in, tile_out), 1) + j * tile_out
    d = jj - idx00                # (tile_in, tile_out) single VPU sub

    if interp == 0:               # nearest: single corner, weight already masked
        w = w_ref[...]            # (tile_in, 1)
        scat = jnp.where(d == 0, w, 0.0)
    else:                         # bilinear: 4 corners at offsets {0,1,W,W+1}
        w = w_ref[...]            # (tile_in, 4), bounds already folded into weights
        w00 = w[:, 0:1]
        w01 = w[:, 1:2]
        w10 = w[:, 2:3]
        w11 = w[:, 3:4]
        if additive:
            # w_out == 1: offsets 1 and w_out coincide -> must sum contributions.
            scat = (jnp.where(d == 0, w00, 0.0)
                    + jnp.where(d == 1, w01, 0.0)
                    + jnp.where(d == w_out, w10, 0.0)
                    + jnp.where(d == w_out + 1, w11, 0.0))
        else:
            # Offsets are pairwise distinct -> cheap nested-select chain.
            scat = jnp.where(d == 0, w00, 0.0)
            scat = jnp.where(d == 1, w01, scat)
            scat = jnp.where(d == w_out, w10, scat)
            scat = jnp.where(d == w_out + 1, w11, scat)

    # Reduce this tile of input pixels on the MXU.
    o_ref[...] += jnp.dot(x_ref[...], scat.astype(x_ref.dtype),
                          preferred_element_type=jnp.float32)


def resample_to_map(x, sample_map, output_shape, interp, interp_weights=None):
    # layout: x is NCHW, sample_map is (in_h, in_w, 2) holding (x, y) OUTPUT
    #         coords, output is NCHW.
    if interp_weights is not None:
        # TODO(synk): weighted_resample_to_map (interp_weights path) not implemented.
        raise NotImplementedError("interp_weights path not implemented")
    if interp == 2:
        # TODO(synk): bispherical interpolation (longitude wrap-around) not implemented.
        raise NotImplementedError("bispherical interpolation not implemented")

    b, c, h_in, w_in = x.shape
    h_out, w_out = int(output_shape[0]), int(output_shape[1])
    n_in = h_in * w_in
    n_out = h_out * w_out
    bc = b * c

    # Tiling: output columns tiled (VMEM bounded, v7x-safe, megacore-parallel);
    # reduction tile of 256 gives the MXU a decent K.
    tile_in = min(256, _round_up(n_in, 128))
    tile_out = min(512, _round_up(n_out, 256))
    bc_pad = _round_up(bc, 8)
    n_in_pad = _round_up(n_in, tile_in)
    n_out_pad = _round_up(n_out, tile_out)

    # bf16 MXU operands only pay off when the matmul M (= bc) is large.
    use_bf16 = bc_pad >= 128
    x_dtype = jnp.bfloat16 if use_bf16 else jnp.float32

    x2 = jnp.zeros((bc_pad, n_in_pad), x_dtype)
    x2 = x2.at[:bc, :n_in].set(x.reshape(bc, n_in).astype(x_dtype))

    # Precompute flattened corner-00 index and bounds-folded corner weights in
    # the wrapper (moves floor/sub/mul and all bounds math off the kernel's
    # per-tile critical path).  Coordinates are clipped AFTER the validity
    # check so idx00 never overflows / aliases with a nonzero weight.
    sm = sample_map.reshape(n_in, 2).astype(jnp.float32)
    sx, sy = sm[:, 0], sm[:, 1]
    if interp == 0:
        # TODO(synk): uses floor(s+0.5); exact .5 ties differ from torch round-half-to-even.
        cx = jnp.floor(sx + 0.5).astype(jnp.int32)
        cy = jnp.floor(sy + 0.5).astype(jnp.int32)
        valid = (cx >= 0) & (cx < w_out) & (cy >= 0) & (cy < h_out)
        weights = jnp.where(valid, 1.0, 0.0)[:, None]          # (n_in, 1)
        idx00 = (jnp.clip(cy, 0, h_out - 1) * w_out
                 + jnp.clip(cx, 0, w_out - 1))
        ncols = 1
    else:
        x0f = jnp.floor(sx)
        y0f = jnp.floor(sy)
        dx = sx - x0f
        dy = sy - y0f
        x0 = x0f.astype(jnp.int32)
        y0 = y0f.astype(jnp.int32)
        vx0 = (x0 >= 0) & (x0 < w_out)
        vx1 = (x0 + 1 >= 0) & (x0 + 1 < w_out)
        vy0 = (y0 >= 0) & (y0 < h_out)
        vy1 = (y0 + 1 >= 0) & (y0 + 1 < h_out)
        w00 = jnp.where(vx0 & vy0, (1.0 - dx) * (1.0 - dy), 0.0)
        w01 = jnp.where(vx1 & vy0, dx * (1.0 - dy), 0.0)
        w10 = jnp.where(vx0 & vy1, (1.0 - dx) * dy, 0.0)
        w11 = jnp.where(vx1 & vy1, dx * dy, 0.0)
        weights = jnp.stack([w00, w01, w10, w11], axis=-1)      # (n_in, 4)
        idx00 = (jnp.clip(y0, -1, h_out - 1) * w_out
                 + jnp.clip(x0, -1, w_out - 1))
        ncols = 4

    # Padding rows: weight 0, idx 0 -> contribute nothing.
    idx_pad = jnp.zeros((n_in_pad, 1), jnp.int32).at[:n_in, 0].set(idx00)
    w_pad = jnp.zeros((n_in_pad, ncols), jnp.float32).at[:n_in].set(weights)

    kernel = functools.partial(
        _resample_kernel, interp=interp, w_out=w_out,
        tile_in=tile_in, tile_out=tile_out, additive=(w_out < 2))

    cost = pl.CostEstimate(
        flops=2 * bc_pad * n_in_pad * n_out_pad,
        transcendentals=0,
        bytes_accessed=(x2.size * x2.dtype.itemsize
                        + idx_pad.size * 4 + w_pad.size * 4
                        + bc_pad * n_out_pad * 4))

    out = pl.pallas_call(
        kernel,
        out_shape=jax.ShapeDtypeStruct((bc_pad, n_out_pad), jnp.float32),
        grid_spec=pltpu.PrefetchScalarGridSpec(
            num_scalar_prefetch=0,
            # j (output tiles) outer & parallel, k (reduction) innermost so the
            # output block stays resident as an accumulator per j.
            grid=(n_out_pad // tile_out, n_in_pad // tile_in),
            in_specs=[
                pl.BlockSpec((tile_in, 1), lambda j, k: (k, 0)),
                pl.BlockSpec((tile_in, ncols), lambda j, k: (k, 0)),
                pl.BlockSpec((bc_pad, tile_in), lambda j, k: (0, k)),
            ],
            out_specs=pl.BlockSpec((bc_pad, tile_out), lambda j, k: (0, j)),
        ),
        compiler_params=pltpu.CompilerParams(
            dimension_semantics=("parallel", "arbitrary")),
        cost_estimate=cost,
    )(idx_pad, w_pad, x2)

    out = out[:bc, :n_out].reshape(b, c, h_out, w_out)
    return out.astype(x.dtype)


class Resample:
    """Pallas port of the PyTorch Resample module (forward only)."""

    def __init__(self, interpolation="bilinear"):
        if interpolation == "nearest":
            self.interp = 0
        elif interpolation == "bilinear":
            self.interp = 1
        elif interpolation == "bispherical":
            self.interp = 2
        else:
            assert False, "Unsupported interpolation type"

    def __call__(self, x, sample_map, output_shape, interp_weights=None):
        return resample_to_map(x, sample_map, output_shape, self.interp,
                               interp_weights)


def _resample_ref(x, sample_map, output_shape, interp):
    """Pure-JAX reference (scatter-add splat)."""
    b, c, h_in, w_in = x.shape
    h_out, w_out = output_shape
    sm = sample_map.reshape(-1, 2).astype(jnp.float32)
    sx, sy = sm[:, 0], sm[:, 1]
    xv = x.reshape(b, c, -1).astype(jnp.float32)
    if interp == 0:
        cx = jnp.floor(sx + 0.5).astype(jnp.int32)
        cy = jnp.floor(sy + 0.5).astype(jnp.int32)
        corners = [(cx, cy, jnp.ones_like(sx))]
    else:
        x0 = jnp.floor(sx).astype(jnp.int32)
        y0 = jnp.floor(sy).astype(jnp.int32)
        dx = sx - x0
        dy = sy - y0
        corners = [(x0, y0, (1 - dx) * (1 - dy)), (x0 + 1, y0, dx * (1 - dy)),
                   (x0, y0 + 1, (1 - dx) * dy), (x0 + 1, y0 + 1, dx * dy)]
    out = jnp.zeros((b, c, h_out * w_out), jnp.float32)
    for cx, cy, w in corners:
        valid = (cx >= 0) & (cx < w_out) & (cy >= 0) & (cy < h_out)
        idx = jnp.where(valid, cy * w_out + cx, 0)
        contrib = xv * (w * valid.astype(jnp.float32))[None, None, :]
        out = out.at[:, :, idx].add(contrib)
    return out.reshape(b, c, h_out, w_out).astype(x.dtype)


if __name__ == "__main__":
    key = jax.random.PRNGKey(0)

    # --- Case 1: small square, single-tile grid ---
    k1, k2, k3, k4 = jax.random.split(key, 4)
    B, C, H_IN, W_IN = 2, 4, 16, 16
    OUT_SHAPE = (16, 16)
    x = jax.random.normal(k1, (B, C, H_IN, W_IN), dtype=jnp.float32)
    sample_map = jax.random.uniform(
        k2, (H_IN, W_IN, 2), dtype=jnp.float32, minval=-1.0, maxval=17.0)

    out = jax.block_until_ready(Resample("bilinear")(x, sample_map, OUT_SHAPE))
    ref = _resample_ref(x, sample_map, OUT_SHAPE, interp=1)
    assert out.shape == (B, C, OUT_SHAPE[0], OUT_SHAPE[1])
    assert jnp.allclose(out, ref, atol=1e-4, rtol=1e-4)

    out_nn = jax.block_until_ready(Resample("nearest")(x, sample_map, OUT_SHAPE))
    ref_nn = _resample_ref(x, sample_map, OUT_SHAPE, interp=0)
    assert jnp.allclose(out_nn, ref_nn, atol=1e-4, rtol=1e-4)

    # --- Case 2: non-square, multi-tile grid (both axes) with padding ---
    B2, C2, H_IN2, W_IN2 = 2, 4, 20, 20          # n_in = 400 -> 2 reduction tiles
    OUT_SHAPE2 = (24, 24)                        # n_out = 576 -> 2 output tiles
    x2 = jax.random.normal(k3, (B2, C2, H_IN2, W_IN2), dtype=jnp.float32)
    sample_map2 = jax.random.uniform(
        k4, (H_IN2, W_IN2, 2), dtype=jnp.float32, minval=-2.0, maxval=26.0)

    out2 = jax.block_until_ready(Resample("bilinear")(x2, sample_map2, OUT_SHAPE2))
    ref2 = _resample_ref(x2, sample_map2, OUT_SHAPE2, interp=1)
    assert out2.shape == (B2, C2, OUT_SHAPE2[0], OUT_SHAPE2[1])
    assert jnp.allclose(out2, ref2, atol=1e-4, rtol=1e-4)

    out2_nn = jax.block_until_ready(Resample("nearest")(x2, sample_map2, OUT_SHAPE2))
    ref2_nn = _resample_ref(x2, sample_map2, OUT_SHAPE2, interp=0)
    assert jnp.allclose(out2_nn, ref2_nn, atol=1e-4, rtol=1e-4)

    print("KERNEL_OK")
</pallas_src>

<mosaic_0001>
module attributes {stable_mosaic.version = 11 : i64} {
  func.func @_resample_kernel(%arg0: i32, %arg1: i32, %arg2: memref<256x1xi32, #tpu.memory_space<vmem>>, %arg3: memref<256x4xf32, #tpu.memory_space<vmem>>, %arg4: memref<8x256xf32, #tpu.memory_space<vmem>>, %arg5: memref<8x256xf32, #tpu.memory_space<vmem>>) attributes {dimension_semantics = [#tpu.dimension_semantics<parallel>, #tpu.dimension_semantics<arbitrary>], iteration_bounds = array<i64: 1, 1>, scalar_prefetch = 0 : i64, scratch_operands = 0 : i64, tpu.core_type = #tpu.core_type<tc>, window_params = [{transform_indices = @transform_0, window_bounds = array<i64: 256, 1>}, {transform_indices = @transform_1, window_bounds = array<i64: 256, 4>}, {transform_indices = @transform_2, window_bounds = array<i64: 8, 256>}, {transform_indices = @transform_3, window_bounds = array<i64: 8, 256>}]} {
    %c0_i32 = arith.constant 0 : i32
    %0 = arith.cmpi eq, %arg1, %c0_i32 : i32
    %1 = arith.extui %0 : i1 to i32
    %c0_i32_0 = arith.constant 0 : i32
    %2 = arith.cmpi ne, %1, %c0_i32_0 : i32
    scf.if %2 {
      %cst_12 = arith.constant 0.000000e+00 : f32
      %41 = vector.broadcast %cst_12 : f32 to vector<8x256xf32>
      %c0_13 = arith.constant 0 : index
      %c0_14 = arith.constant 0 : index
      %42 = vector.load %arg5[%c0_13, %c0_14] : memref<8x256xf32, #tpu.memory_space<vmem>>, vector<8x256xf32>
      tpu.vector_store %arg5[%c0_13, %c0_14], %41 {strides = array<i32>} : memref<8x256xf32, #tpu.memory_space<vmem>>, vector<8x256xf32>,
    } else {
    }
    %c0 = arith.constant 0 : index
    %c0_1 = arith.constant 0 : index
    %3 = vector.load %arg2[%c0, %c0_1] : memref<256x1xi32, #tpu.memory_space<vmem>>, vector<256x1xi32>
    %4 = tpu.iota {dimensions = array<i32: 1>} : vector<256x256xi32>
    %c256_i32 = arith.constant 256 : i32
    %5 = arith.muli %arg0, %c256_i32 : i32
    %6 = vector.broadcast %5 : i32 to vector<256x256xi32>
    %7 = arith.addi %4, %6 : vector<256x256xi32>
    %8 = vector.broadcast %3 : vector<256x1xi32> to vector<256x256xi32>
    %9 = arith.subi %7, %8 : vector<256x256xi32>
    %c0_2 = arith.constant 0 : index
    %c0_3 = arith.constant 0 : index
    %10 = vector.load %arg3[%c0_2, %c0_3] : memref<256x4xf32, #tpu.memory_space<vmem>>, vector<256x4xf32>
    %11 = vector.extract_strided_slice %10 {offsets = [0, 0], sizes = [256, 1], strides = [1, 1]} : vector<256x4xf32> to vector<256x1xf32>
    %12 = vector.extract_strided_slice %10 {offsets = [0, 1], sizes = [256, 1], strides = [1, 1]} : vector<256x4xf32> to vector<256x1xf32>
    %13 = vector.extract_strided_slice %10 {offsets = [0, 2], sizes = [256, 1], strides = [1, 1]} : vector<256x4xf32> to vector<256x1xf32>
    %14 = vector.extract_strided_slice %10 {offsets = [0, 3], sizes = [256, 1], strides = [1, 1]} : vector<256x4xf32> to vector<256x1xf32>
    %c0_i32_4 = arith.constant 0 : i32
    %15 = vector.broadcast %c0_i32_4 : i32 to vector<256x256xi32>
    %16 = arith.cmpi eq, %9, %15 : vector<256x256xi32>
    %cst = arith.constant 0.000000e+00 : f32
    %17 = vector.shape_cast %11 : vector<256x1xf32> to vector<256x1xf32>
    %18 = vector.broadcast %17 : vector<256x1xf32> to vector<256x256xf32>
    %19 = vector.broadcast %cst : f32 to vector<256x256xf32>
    %20 = arith.select %16, %18, %19 : vector<256x256xi1>, vector<256x256xf32>
    %c1_i32 = arith.constant 1 : i32
    %21 = vector.broadcast %c1_i32 : i32 to vector<256x256xi32>
    %22 = arith.cmpi eq, %9, %21 : vector<256x256xi32>
    %23 = vector.shape_cast %12 : vector<256x1xf32> to vector<256x1xf32>
    %24 = vector.broadcast %23 : vector<256x1xf32> to vector<256x256xf32>
    %25 = arith.select %22, %24, %20 : vector<256x256xi1>, vector<256x256xf32>
    %c16_i32 = arith.constant 16 : i32
    %26 = vector.broadcast %c16_i32 : i32 to vector<256x256xi32>
    %27 = arith.cmpi eq, %9, %26 : vector<256x256xi32>
    %28 = vector.shape_cast %13 : vector<256x1xf32> to vector<256x1xf32>
    %29 = vector.broadcast %28 : vector<256x1xf32> to vector<256x256xf32>
    %30 = arith.select %27, %29, %25 : vector<256x256xi1>, vector<256x256xf32>
    %c17_i32 = arith.constant 17 : i32
    %31 = vector.broadcast %c17_i32 : i32 to vector<256x256xi32>
    %32 = arith.cmpi eq, %9, %31 : vector<256x256xi32>
    %33 = vector.shape_cast %14 : vector<256x1xf32> to vector<256x1xf32>
    %34 = vector.broadcast %33 : vector<256x1xf32> to vector<256x256xf32>
    %35 = arith.select %32, %34, %30 : vector<256x256xi1>, vector<256x256xf32>
    %c0_5 = arith.constant 0 : index
    %c0_6 = arith.constant 0 : index
    %36 = vector.load %arg5[%c0_5, %c0_6] : memref<8x256xf32, #tpu.memory_space<vmem>>, vector<8x256xf32>
    %c0_7 = arith.constant 0 : index
    %c0_8 = arith.constant 0 : index
    %37 = vector.load %arg4[%c0_7, %c0_8] : memref<8x256xf32, #tpu.memory_space<vmem>>, vector<8x256xf32>
    %cst_9 = arith.constant dense<0.000000e+00> : vector<8x256xf32>
    %38 = tpu.matmul %37, %35, %cst_9 {dimension_numbers = #tpu.dot_dimension_numbers<[1], [0], [0], [1], [0, 0, 1, 1], [], []>} : vector<8x256xf32>, vector<256x256xf32>, vector<8x256xf32> -> vector<8x256xf32>
    %39 = arith.addf %36, %38 : vector<8x256xf32>
    %c0_10 = arith.constant 0 : index
    %c0_11 = arith.constant 0 : index
    %40 = vector.load %arg5[%c0_10, %c0_11] : memref<8x256xf32, #tpu.memory_space<vmem>>, vector<8x256xf32>
    tpu.vector_store %arg5[%c0_10, %c0_11], %39 {strides = array<i32>} : memref<8x256xf32, #tpu.memory_space<vmem>>, vector<8x256xf32>,
    return
  }
  func.func @transform_0(%arg0: i32, %arg1: i32) -> (i32, i32) {
    %c0_i32 = arith.constant 0 : i32
    %c0_i32_0 = arith.constant 0 : i32
    return %arg1, %c0_i32 : i32, i32
  }
  func.func @transform_1(%arg0: i32, %arg1: i32) -> (i32, i32) {
    %c0_i32 = arith.constant 0 : i32
    %c0_i32_0 = arith.constant 0 : i32
    return %arg1, %c0_i32 : i32, i32
  }
  func.func @transform_2(%arg0: i32, %arg1: i32) -> (i32, i32) {
    %c0_i32 = arith.constant 0 : i32
    %c0_i32_0 = arith.constant 0 : i32
    return %c0_i32, %arg1 : i32, i32
  }
  func.func @transform_3(%arg0: i32, %arg1: i32) -> (i32, i32) {
    %c0_i32 = arith.constant 0 : i32
    %c0_i32_0 = arith.constant 0 : i32
    return %c0_i32, %arg0 : i32, i32
  }
}

</mosaic_0001>

<bundles_post_ra>
// kernel: tpu_custom_call.1
= control target key start
LH: loop header
LB: loop body
LE: loop exit
PB: predicated region body
PF: predicated region fallthrough
CT: control target
= control target key end

     0   :  { %v1468_v2 = vmov 0   ;;  %s2924_s0 = inlined_call_operand.vmem [shape: s32[256,1], index: 0, kind: input, shape index: {}]   ;;  %s2925_s1 = inlined_call_operand.vmem [shape: f32[256,4], index: 1, kind: input, shape index: {}]   ;;  %s2926_s2 = inlined_call_operand.vmem [shape: f32[8,256], index: 2, kind: input, shape index: {}]   ;;  %s2927_s3 = inlined_call_operand.hbm [shape: f32[8,256], index: 3, kind: output, shape index: {}]  }
   0x1   :  { %v23_v0 = vld [vmem:[%s2924_s0 + $0x10] sm:$0xff]  ;;  %v21_v1 = vld [vmem:[%s2924_s0] sm:$0xff]  ;;  %1408 = vset.pattern.permute.xlu1 %v1468_v2  ;;  %1407 = vset.pattern.permute.xlu0 %v1468_v2  ;;  %v24_v3 = vld [vmem:[%s2924_s0 + $0x18] sm:$0xff] }
   0x2   :  { %67 = vperm.xlu1 %1408, %v23_v0   ;;  %61 = vperm.xlu0 %1407, %v21_v1   ;;  %v22_v4 = vld [vmem:[%s2924_s0 + $0x8] sm:$0xff]  ;;  %v25_v6 = vld [vmem:[%s2924_s0 + $0x20] sm:$0xff]  ;;  %v28_v7 = vld [vmem:[%s2924_s0 + $0x38] sm:$0xff] }
   0x3   :  { %v26_v5 = vld [vmem:[%s2924_s0 + $0x28] sm:$0xff]  ;;  %v27_v8 = vld [vmem:[%s2924_s0 + $0x30] sm:$0xff]  ;;  %v29_v10 = vld [vmem:[%s2924_s0 + $0x40] sm:$0xff] }
   0x4   :  { %v30_v9 = vld [vmem:[%s2924_s0 + $0x48] sm:$0xff]  ;;  %v32_v11 = vld [vmem:[%s2924_s0 + $0x58] sm:$0xff]  ;;  %v31_v12 = vld [vmem:[%s2924_s0 + $0x50] sm:$0xff] }
   0x6   :  { %70 = vperm.xlu1 %1408, %v24_v3   ;;  %64 = vperm.xlu0 %1407, %v22_v4  }
   0xa   :  { %76 = vperm.xlu1 %1408, %v26_v5   ;;  %73 = vperm.xlu0 %1407, %v25_v6  }
   0xe   :  { %82 = vperm.xlu1 %1408, %v28_v7   ;;  %79 = vperm.xlu0 %1407, %v27_v8  }
  0x12   :  { %88 = vperm.xlu1 %1408, %v30_v9   ;;  %85 = vperm.xlu0 %1407, %v29_v10  }
  0x13   :  { %8 = vsyncpa [#allocation3], 0  ;;  %v34_v13 = vld [vmem:[%s2924_s0 + $0x68] sm:$0xff]  ;;  %v33_v14 = vld [vmem:[%s2924_s0 + $0x60] sm:$0xff]  ;;  %v2930_v5 = vmov 1   ;;  %v2928_v6 = vmov 3  }
  0x14   :  { %v36_v15 = vld [vmem:[%s2924_s0 + $0x78] sm:$0xff]  ;;  %v35_v16 = vld [vmem:[%s2924_s0 + $0x70] sm:$0xff]  ;;  %v38_v17 = vld [vmem:[%s2924_s0 + $0x88] sm:$0xff]  ;;  %s1472_s7 = smov [#allocation2]  }
  0x15   :  { %v37_v18 = vld [vmem:[%s2924_s0 + $0x80] sm:$0xff]  ;;  %v40_v19 = vld [vmem:[%s2924_s0 + $0x98] sm:$0xff]  ;;  %v39_v20 = vld [vmem:[%s2924_s0 + $0x90] sm:$0xff]  ;;  %s1393_s8 = sshll.u32 %s1472_s7, 4  ;;  %s1394_s8 = int_to_ptr.vmem [resolvable:$true] %s1393_s8 }
  0x16   :  { %94 = vperm.xlu1 %1408, %v32_v11   ;;  %91 = vperm.xlu0 %1407, %v31_v12   ;;  %v42_v21 = vld [vmem:[%s2924_s0 + $0xa8] sm:$0xff]  ;;  %v41_v22 = vld [vmem:[%s2924_s0 + $0xa0] sm:$0xff]  ;;  %v44_v23 = vld [vmem:[%s2924_s0 + $0xb8] sm:$0xff]  ;;  %s1446_s9 = scalar_lea.vmem %s1394_s8, 256  ;;  %p1451_p1 = scmp.lt.s32.totalorder %s1394_s8, %s1394_s8 }
  0x17   :  { %v43_v24 = vld [vmem:[%s2924_s0 + $0xb0] sm:$0xff]  ;;  %v46_v25 = vld [vmem:[%s2924_s0 + $0xc8] sm:$0xff]  ;;  %v45_v26 = vld [vmem:[%s2924_s0 + $0xc0] sm:$0xff]  ;;  %p1447_p0 = scmp.ne.s32.totalorder %s1394_s8, %s1446_s9  ;;  %p1452_p2 = scmp.lt.s32.totalorder %s1446_s9, %s1446_s9 }
  0x18   :  { %v48_v27 = vld [vmem:[%s2924_s0 + $0xd8] sm:$0xff]  ;;  %v47_v28 = vld [vmem:[%s2924_s0 + $0xd0] sm:$0xff]  ;;  %v50_v29 = vld [vmem:[%s2924_s0 + $0xe8] sm:$0xff] }
  0x19   :  { %v49_v30 = vld [vmem:[%s2924_s0 + $0xe0] sm:$0xff]  ;;  %v52_v31 = vld [vmem:[%s2924_s0 + $0xf8] sm:$0xff]  ;;  %v51_v32 = vld [vmem:[%s2924_s0 + $0xf0] sm:$0xff]  ;;  %p1453_p3 = por %p1452_p2, %p1451_p1 }
  0x1a   :  { %100 = vperm.xlu1 %1408, %v34_v13   ;;  %97 = vperm.xlu0 %1407, %v33_v14   ;;  %v1592_v33 = vld [vmem:[%s2925_s1 + $0x8] sm:$0xff]  ;;  %v1597_v34 = vld [vmem:[%s2925_s1] sm:$0xff]  ;;  %v1604_v35 = vld [vmem:[%s2925_s1 + $0x18] sm:$0xff] }
  0x1b   :  { %v1609_v36 = vld [vmem:[%s2925_s1 + $0x10] sm:$0xff]  ;;  %v1616_v37 = vld [vmem:[%s2925_s1 + $0x28] sm:$0xff]  ;;  %v1621_v38 = vld [vmem:[%s2925_s1 + $0x20] sm:$0xff]  ;;  %p1454_p4 = pnand %p1453_p3, %p1447_p0 }
  0x1c   :  { %v1628_v39 = vld [vmem:[%s2925_s1 + $0x38] sm:$0xff]  ;;  %v1633_v40 = vld [vmem:[%s2925_s1 + $0x30] sm:$0xff]  ;;  %v1640_v41 = vld [vmem:[%s2925_s1 + $0x48] sm:$0xff] }
  0x1d   :  { %v1645_v42 = vld [vmem:[%s2925_s1 + $0x40] sm:$0xff]  ;;  %v1652_v43 = vld [vmem:[%s2925_s1 + $0x58] sm:$0xff]  ;;  %v1657_v44 = vld [vmem:[%s2925_s1 + $0x50] sm:$0xff] }
  0x1e   :  { %106 = vperm.xlu1 %1408, %v36_v15   ;;  %103 = vperm.xlu0 %1407, %v35_v16   ;;  %v1664_v45 = vld [vmem:[%s2925_s1 + $0x68] sm:$0xff]  ;;  %v1669_v46 = vld [vmem:[%s2925_s1 + $0x60] sm:$0xff]  ;;  %v1676_v47 = vld [vmem:[%s2925_s1 + $0x78] sm:$0xff] }
  0x1f   :  { %v1681_v48 = vld [vmem:[%s2925_s1 + $0x70] sm:$0xff]  ;;  %v1688_v49 = vld [vmem:[%s2925_s1 + $0x88] sm:$0xff]  ;;  %v236_v50 = vld [vmem:[%s2925_s1 + $0x80] sm:$0xff] }
  0x20   :  { %v1697_v51 = vld [vmem:[%s2925_s1 + $0x98] sm:$0xff]  ;;  %v1702_v52 = vld [vmem:[%s2925_s1 + $0x90] sm:$0xff]  ;;  %v1709_v53 = vld [vmem:[%s2925_s1 + $0xa8] sm:$0xff] }
  0x21   :  { %3028 = vst [vmem:[#allocation5_spill] sm:$0xff] %v1697_v51  ;;  %v1714_v54 = vld [vmem:[%s2925_s1 + $0xa0] sm:$0xff]  ;;  %v1721_v55 = vld [vmem:[%s2925_s1 + $0xb8] sm:$0xff]  ;;  %v1726_v56 = vld [vmem:[%s2925_s1 + $0xb0] sm:$0xff] }
  0x22   :  { %112 = vperm.xlu1 %1408, %v38_v17   ;;  %109 = vperm.xlu0 %1407, %v37_v18   ;;  %v1733_v57 = vld [vmem:[%s2925_s1 + $0xc8] sm:$0xff]  ;;  %v1738_v58 = vld [vmem:[%s2925_s1 + $0xc0] sm:$0xff]  ;;  %v1745_v59 = vld [vmem:[%s2925_s1 + $0xd8] sm:$0xff] }
  0x23   :  { %v1750_v60 = vld [vmem:[%s2925_s1 + $0xd0] sm:$0xff]  ;;  %v1757_v61 = vld [vmem:[%s2925_s1 + $0xe8] sm:$0xff]  ;;  %v1762_v62 = vld [vmem:[%s2925_s1 + $0xe0] sm:$0xff] }
  0x24   :  { %v1769_v63 = vld [vmem:[%s2925_s1 + $0xf8] sm:$0xff]  ;;  %v1774_v0 = vld [vmem:[%s2925_s1 + $0xf0] sm:$0xff] }
  0x26   :  { %118 = vperm.xlu1 %1408, %v40_v19   ;;  %115 = vperm.xlu0 %1407, %v39_v20  }
  0x2a   :  { %124 = vperm.xlu1 %1408, %v42_v21   ;;  %121 = vperm.xlu0 %1407, %v41_v22  }
  0x2e   :  { %130 = vperm.xlu1 %1408, %v44_v23   ;;  %127 = vperm.xlu0 %1407, %v43_v24  }
  0x32   :  { %136 = vperm.xlu1 %1408, %v46_v25   ;;  %133 = vperm.xlu0 %1407, %v45_v26  }
  0x36   :  { %142 = vperm.xlu1 %1408, %v48_v27   ;;  %139 = vperm.xlu0 %1407, %v47_v28  }
  0x3a   :  { %148 = vperm.xlu1 %1408, %v50_v29   ;;  %145 = vperm.xlu0 %1407, %v49_v30  }
  0x3e   :  { %154 = vperm.xlu1 %1408, %v52_v31   ;;  %151 = vperm.xlu0 %1407, %v51_v32  }
  0x42   :  { %323 = vperm.xlu1 %1408, %v1592_v33   ;;  %318 = vperm.xlu0 %1407, %v1597_v34  }
  0x46   :  { %333 = vperm.xlu1 %1408, %v1604_v35   ;;  %328 = vperm.xlu0 %1407, %v1609_v36  }
  0x4a   :  { %343 = vperm.xlu1 %1408, %v1616_v37   ;;  %338 = vperm.xlu0 %1407, %v1621_v38  }
  0x4e   :  { %353 = vperm.xlu1 %1408, %v1628_v39   ;;  %348 = vperm.xlu0 %1407, %v1633_v40  }
  0x52   :  { %363 = vperm.xlu1 %1408, %v1640_v41   ;;  %358 = vperm.xlu0 %1407, %v1645_v42  }
  0x56   :  { %373 = vperm.xlu1 %1408, %v1652_v43   ;;  %368 = vperm.xlu0 %1407, %v1657_v44  }
  0x5a   :  { %383 = vperm.xlu1 %1408, %v1664_v45   ;;  %378 = vperm.xlu0 %1407, %v1669_v46  }
  0x5e   :  { %393 = vperm.xlu1 %1408, %v1676_v47   ;;  %388 = vperm.xlu0 %1407, %v1681_v48  }
  0x62   :  { %403 = vperm.xlu1 %1408, %v1688_v49   ;;  %398 = vperm.xlu0 %1407, %v236_v50  }
  0x66   :  { %413 = vperm.xlu1 %1408, %v1697_v51   ;;  %408 = vperm.xlu0 %1407, %v1702_v52  }
  0x6a   :  { %423 = vperm.xlu1 %1408, %v1709_v53   ;;  %418 = vperm.xlu0 %1407, %v1714_v54  }
  0x6e   :  { %433 = vperm.xlu1 %1408, %v1721_v55   ;;  %428 = vperm.xlu0 %1407, %v1726_v56  }
  0x72   :  { %443 = vperm.xlu1 %1408, %v1733_v57   ;;  %438 = vperm.xlu0 %1407, %v1738_v58  }
  0x76   :  { %453 = vperm.xlu1 %1408, %v1745_v59   ;;  %448 = vperm.xlu0 %1407, %v1750_v60  }
  0x7a   :  { %463 = vperm.xlu1 %1408, %v1757_v61   ;;  %458 = vperm.xlu0 %1407, %v1762_v62  }
  0x7d   :  { %v1776_v1 = vpop.permute.xlu1 %67  ;;  %v1778_v2 = vpop.permute.xlu0 %61 }
  0x7e   :  { %473 = vperm.xlu1 %1408, %v1769_v63   ;;  %468 = vperm.xlu0 %1407, %v1774_v0  }
  0x81   :  { %v1782_v3 = vpop.permute.xlu1 %70  ;;  %v1784_v4 = vpop.permute.xlu0 %64 }
  0x82   :  { %1409 = vset.pattern.permute.xlu1 %v2930_v5  ;;  %1412 = vset.pattern.permute.xlu0 %v2928_v6 }
  0x83   :  { %609 = vperm.xlu1 %1409, %v1592_v33   ;;  %1117 = vperm.xlu0 %1412, %v1597_v34  }
  0x85   :  { %v1790_v7 = vpop.permute.xlu1 %76  ;;  %v1792_v8 = vpop.permute.xlu0 %73 }
  0x87   :  { %613 = vperm.xlu1 %1409, %v1609_v36   ;;  %1241 = vperm.xlu0 %1412, %v1769_v63  }
  0x89   :  { %v1796_v9 = vpop.permute.xlu1 %82  ;;  %v1798_v10 = vpop.permute.xlu0 %79 }
  0x8b   :  { %621 = vperm.xlu1 %1409, %v1621_v38   ;;  %1225 = vperm.xlu0 %1412, %v1745_v59  }
  0x8d   :  { %v1802_v11 = vpop.permute.xlu1 %88  ;;  %v1804_v12 = vpop.permute.xlu0 %85 }
  0x8f   :  { %629 = vperm.xlu1 %1409, %v1633_v40   ;;  %1221 = vperm.xlu0 %1412, %v1750_v60  }
  0x91   :  { %v1808_v13 = vpop.permute.xlu1 %94  ;;  %v1810_v14 = vpop.permute.xlu0 %91 }
  0x93   :  { %637 = vperm.xlu1 %1409, %v1645_v42   ;;  %1205 = vperm.xlu0 %1412, %v1726_v56  }
  0x95   :  { %v1814_v15 = vpop.permute.xlu1 %100  ;;  %v1816_v16 = vpop.permute.xlu0 %97 }
  0x97   :  { %645 = vperm.xlu1 %1409, %v1657_v44   ;;  %1201 = vperm.xlu0 %1412, %v1709_v53  }
  0x99   :  { %v1820_v17 = vpop.permute.xlu1 %106  ;;  %v1822_v18 = vpop.permute.xlu0 %103 }
  0x9b   :  { %653 = vperm.xlu1 %1409, %v1669_v46   ;;  %1433 = vset.pattern.permute.xlu0 %v2930_v5 }
  0x9c   :  { %605 = vperm.xlu0 %1433, %v1597_v34  }
  0x9d   :  { %v1827_v19 = vpop.permute.xlu1 %112  ;;  %v1829_v20 = vpop.permute.xlu0 %109 }
  0x9e   :  { %3029 = vst [vmem:[#allocation6_spill] sm:$0xff] %v1827_v19  ;;  %3030 = vst [vmem:[#allocation7_spill] sm:$0xff] %v1829_v20 }
  0x9f   :  { %665 = vperm.xlu1 %1409, %v1676_v47  }
  0xa0   :  { %617 = vperm.xlu0 %1433, %v1604_v35  }
  0xa1   :  { %v1833_v21 = vpop.permute.xlu1 %118  ;;  %v1835_v22 = vpop.permute.xlu0 %115 }
  0xa2   :  { %3031 = vst [vmem:[#allocation8_spill] sm:$0xff] %v1833_v21 }
  0xa3   :  { %661 = vperm.xlu1 %1409, %v1681_v48  }
  0xa4   :  { %625 = vperm.xlu0 %1433, %v1616_v37  }
  0xa5   :  { %v1839_v23 = vpop.permute.xlu1 %124  ;;  %v1841_v24 = vpop.permute.xlu0 %121 }
  0xa6   :  { %3032 = vst [vmem:[#allocation9_spill] sm:$0xff] %v1839_v23  ;;  %3033 = vst [vmem:[#allocation10_spill] sm:$0xff] %v1841_v24 }
  0xa7   :  { %1410 = vset.pattern.permute.xlu1 %v2928_v6 }
  0xa8   :  { %1177 = vperm.xlu1 %1410, %v1676_v47   ;;  %633 = vperm.xlu0 %1433, %v1628_v39  }
  0xa9   :  { %v1846_v25 = vpop.permute.xlu1 %130  ;;  %v1848_v26 = vpop.permute.xlu0 %127 }
  0xaa   :  { %3034 = vst [vmem:[#allocation11_spill] sm:$0xff] %v1846_v25  ;;  %3035 = vst [vmem:[#allocation12_spill] sm:$0xff] %v1848_v26 }
  0xac   :  { %1173 = vperm.xlu1 %1410, %v1681_v48   ;;  %641 = vperm.xlu0 %1433, %v1640_v41  }
  0xad   :  { %v1852_v27 = vpop.permute.xlu1 %136  ;;  %v1854_v28 = vpop.permute.xlu0 %133 }
  0xae   :  { %3036 = vst [vmem:[#allocation13_spill] sm:$0xff] %v1852_v27 }
  0xb0   :  { %1169 = vperm.xlu1 %1410, %v1664_v45   ;;  %649 = vperm.xlu0 %1433, %v1652_v43  }
  0xb1   :  { %v1858_v29 = vpop.permute.xlu1 %142  ;;  %v1860_v30 = vpop.permute.xlu0 %139 }
  0xb2   :  { %3037 = vst [vmem:[#allocation14_spill] sm:$0xff] %v1858_v29  ;;  %3038 = vst [vmem:[#allocation15_spill] sm:$0xff] %v1860_v30 }
  0xb4   :  { %1165 = vperm.xlu1 %1410, %v1669_v46   ;;  %657 = vperm.xlu0 %1433, %v1664_v45  }
  0xb5   :  { %v1864_v31 = vpop.permute.xlu1 %148  ;;  %v1866_v32 = vpop.permute.xlu0 %145 }
  0xb6   :  { %3039 = vst [vmem:[#allocation16_spill] sm:$0xff] %v1864_v31 }
  0xb8   :  { %1161 = vperm.xlu1 %1410, %v1652_v43   ;;  %721 = vperm.xlu0 %1433, %v1757_v61  }
  0xb9   :  { %v1870_v50 = vpop.permute.xlu1 %154  ;;  %v1872_v6 = vpop.permute.xlu0 %151 }
  0xba   :  { %3040 = vst [vmem:[#allocation17_spill] sm:$0xff] %v1870_v50  ;;  %3041 = vst [vmem:[#allocation18_spill] sm:$0xff] %v1872_v6 }
  0xbc   :  { %1157 = vperm.xlu1 %1410, %v1657_v44   ;;  %717 = vperm.xlu0 %1433, %v1762_v62  }
  0xbd   :  { %v1876_v5 = vpop.permute.xlu1 %323  ;;  %v1878_v20 = vpop.permute.xlu0 %318 }
  0xbe   :  { %3042 = vst [vmem:[#allocation19_spill] sm:$0xff] %v1876_v5  ;;  %3043 = vst [vmem:[#allocation20_spill] sm:$0xff] %v1878_v20 }
  0xc0   :  { %1153 = vperm.xlu1 %1410, %v1640_v41   ;;  %701 = vperm.xlu0 %1433, %v1738_v58  }
  0xc1   :  { %v1882_v19 = vpop.permute.xlu1 %333  ;;  %v1884_v23 = vpop.permute.xlu0 %328 }
  0xc2   :  { %3044 = vst [vmem:[#allocation21_spill] sm:$0xff] %v1882_v19  ;;  %3045 = vst [vmem:[#allocation22_spill] sm:$0xff] %v1884_v23  ;;  %v2949_v19 = vmov 2  }
  0xc4   :  { %1149 = vperm.xlu1 %1410, %v1645_v42   ;;  %697 = vperm.xlu0 %1433, %v1721_v55  }
  0xc5   :  { %v1888_v27 = vpop.permute.xlu1 %343  ;;  %v1890_v50 = vpop.permute.xlu0 %338 }
  0xc6   :  { %3046 = vst [vmem:[#allocation23_spill] sm:$0xff] %v1888_v27  ;;  %3047 = vst [vmem:[#allocation24_spill] sm:$0xff] %v1890_v50 }
  0xc8   :  { %1145 = vperm.xlu1 %1410, %v1628_v39   ;;  %681 = vperm.xlu0 %1433, %v1697_v51  }
  0xc9   :  { %v1894_v20 = vpop.permute.xlu1 %353  ;;  %v1896_v5 = vpop.permute.xlu0 %348 }
  0xca   :  { %3048 = vst [vmem:[#allocation25_spill] sm:$0xff] %v1894_v20  ;;  %3049 = vst [vmem:[#allocation26_spill] sm:$0xff] %v1896_v5  ;;  %v53_v5 = vlaneseq }
  0xcc   :  { %1141 = vperm.xlu1 %1410, %v1633_v40   ;;  %677 = vperm.xlu0 %1433, %v1702_v52  }
  0xcd   :  { %v1900_v23 = vpop.permute.xlu1 %363  ;;  %v1902_v29 = vpop.permute.xlu0 %358 }
  0xce   :  { %3050 = vst [vmem:[#allocation27_spill] sm:$0xff] %v1900_v23  ;;  %3051 = vst [vmem:[#allocation28_spill] sm:$0xff] %v1902_v29  ;;  %v1917_v29 = vand.u32 127, %v53_v5 }
  0xd0   :  { %1137 = vperm.xlu1 %1410, %v1616_v37   ;;  %1437 = vset.pattern.permute.xlu0 %v2949_v19  ;;  %3056 = vst [vmem:[#allocation33_spill] sm:$0xff] %v1917_v29 }
  0xd1   :  { %v1906_v50 = vpop.permute.xlu1 %373  ;;  %v1908_v27 = vpop.permute.xlu0 %368  ;;  %921 = vperm.xlu0 %1437, %v1676_v47   ;;  %v1926_v47 = vadd.s32 128, %v1917_v29 }
  0xd2   :  { %3052 = vst [vmem:[#allocation29_spill] sm:$0xff] %v1906_v50  ;;  %3053 = vst [vmem:[#allocation30_spill] sm:$0xff] %v1908_v27 }
  0xd3   :  { %3059 = vst [vmem:[#allocation36_spill] sm:$0xff] %v1926_v47  ;;  %v1931_v27 = vsub.s32 %v1926_v47, %v1835_v22 }
  0xd4   :  { %1133 = vperm.xlu1 %1410, %v1621_v38  }
  0xd5   :  { %v1912_v20 = vpop.permute.xlu1 %383  ;;  %v1914_v51 = vpop.permute.xlu0 %378  ;;  %917 = vperm.xlu0 %1437, %v1681_v48   ;;  %3060 = vst [vmem:[#allocation37_spill] sm:$0xff] %v1931_v27  ;;  %vm289_vm0 = vcmp.eq.s32.totalorder %v1931_v27, 0 }
  0xd6   :  { %3054 = vst [vmem:[#allocation31_spill] sm:$0xff] %v1912_v20  ;;  %3055 = vst [vmem:[#allocation32_spill] sm:$0xff] %v1914_v51 }
  0xd8   :  { %1129 = vperm.xlu1 %1410, %v1604_v35  }
  0xd9   :  { %v1920_v19 = vpop.permute.xlu1 %393  ;;  %v1922_v23 = vpop.permute.xlu0 %388  ;;  %913 = vperm.xlu0 %1437, %v1664_v45   ;;  %v1941_v45 = vsub.s32 %v1926_v47, %v1841_v24 }
  0xda   :  { %3057 = vst [vmem:[#allocation34_spill] sm:$0xff] %v1920_v19  ;;  %3058 = vst [vmem:[#allocation35_spill] sm:$0xff] %v1922_v23  ;;  %v1969_v23 = vsub.s32 %v1926_v47, %v1854_v28  ;;  %v3071_v19 = vmov 2  }
  0xdb   :  { %3063 = vst [vmem:[#allocation40_spill] sm:$0xff] %v1941_v45  ;;  %vm293_vm1 = vcmp.eq.s32.totalorder %v1941_v45, 0 }
  0xdc   :  { %1125 = vperm.xlu1 %1410, %v1609_v36   ;;  %3070 = vst [vmem:[#allocation46_spill] sm:$0xff] %v1969_v23  ;;  %vm301_vm3 = vcmp.eq.s32.totalorder %v1969_v23, 0  ;;  %vm589_vm14 = vcmp.eq.s32.totalorder %v1969_v23, 1  ;;  %v2221_v23 = vsub.s32 %v1926_v47, %v1784_v4 }
  0xdd   :  { %v1933_v48 = vpop.permute.xlu1 %403  ;;  %v1935_v5 = vpop.permute.xlu0 %398  ;;  %909 = vperm.xlu0 %1437, %v1669_v46   ;;  %v1955_v46 = vsub.s32 %v1926_v47, %v1848_v26 }
  0xde   :  { %3061 = vst [vmem:[#allocation38_spill] sm:$0xff] %v1933_v48  ;;  %3062 = vst [vmem:[#allocation39_spill] sm:$0xff] %v1935_v5  ;;  %v3065_v5 = vmov 1  }
  0xdf   :  { %3066 = vst [vmem:[#allocation42_spill] sm:$0xff] %v1955_v46  ;;  %vm297_vm2 = vcmp.eq.s32.totalorder %v1955_v46, 0  ;;  %3116 = vst [vmem:[#allocation90_spill] sm:$0xff] %v2221_v23 }
  0xe0   :  { %1121 = vperm.xlu1 %1410, %v1592_v33  }
  0xe1   :  { %v1943_v50 = vpop.permute.xlu1 %413  ;;  %v1946_v51 = vpop.permute.xlu0 %408  ;;  %905 = vperm.xlu0 %1437, %v1652_v43  }
  0xe2   :  { %3064 = vst [vmem:[#allocation41_spill] sm:$0xff] %v1943_v50  ;;  %v1950_v48 = vsel %vm289_vm0, %v1946_v51, 0.0 }
  0xe4   :  { %1411 = vset.pattern.permute.xlu1 %v3065_v5 }
  0xe5   :  { %729 = vperm.xlu1 %1411, %v1769_v63   ;;  %v1958_v24 = vpop.permute.xlu1 %423  ;;  %v1961_v20 = vpop.permute.xlu0 %418  ;;  %901 = vperm.xlu0 %1437, %v1657_v44   ;;  %v1984_v44 = vsub.s32 %v1926_v47, %v1860_v30 }
  0xe6   :  { %3067 = vst [vmem:[#allocation43_spill] sm:$0xff] %v1958_v24  ;;  %3068 = vst [vmem:[#allocation44_spill] sm:$0xff] %v1961_v20  ;;  %v1965_v43 = vsel %vm293_vm1, %v1961_v20, 0.0 }
  0xe7   :  { %3069 = vst [vmem:[#allocation45_spill] sm:$0xff] %v1965_v43  ;;  %3075 = vst [vmem:[#allocation50_spill] sm:$0xff] %v1984_v44  ;;  %vm305_vm4 = vcmp.eq.s32.totalorder %v1984_v44, 0 }
  0xe9   :  { %1413 = vset.pattern.permute.xlu1 %v3071_v19  ;;  %v1972_v26 = vpop.permute.xlu1 %433  ;;  %v1975_v24 = vpop.permute.xlu0 %428  ;;  %897 = vperm.xlu0 %1437, %v1640_v41   ;;  %v1999_v41 = vsub.s32 %v1926_v47, %v1866_v32 }
  0xea   :  { %3072 = vst [vmem:[#allocation47_spill] sm:$0xff] %v1972_v26  ;;  %3073 = vst [vmem:[#allocation48_spill] sm:$0xff] %v1975_v24  ;;  %v1979_v45 = vsel %vm297_vm2, %v1975_v24, 0.0  ;;  %985 = vperm.xlu1 %1413, %v1769_v63  }
  0xeb   :  { %3074 = vst [vmem:[#allocation49_spill] sm:$0xff] %v1979_v45  ;;  %3077 = vst [vmem:[#allocation52_spill] sm:$0xff] %v1999_v41  ;;  %vm309_vm5 = vcmp.eq.s32.totalorder %v1999_v41, 0  ;;  %vm597_vm11 = vcmp.eq.s32.totalorder %v1999_v41, 1 }
  0xed   :  { %v1986_v20 = vpop.permute.xlu1 %443  ;;  %v1989_v43 = vpop.permute.xlu0 %438  ;;  %893 = vperm.xlu0 %1437, %v1645_v42  }
  0xee   :  { %3076 = vst [vmem:[#allocation51_spill] sm:$0xff] %v1986_v20  ;;  %v1993_v46 = vsel %vm301_vm3, %v1989_v43, 0.0  ;;  %1414 = vset.pattern.permute.xlu1 %v3065_v5 }
  0xef   :  { %725 = vperm.xlu1 %1414, %v1774_v0  }
  0xf1   :  { %v2001_v63 = vpop.permute.xlu1 %453  ;;  %v2004_v24 = vpop.permute.xlu0 %448  ;;  %889 = vperm.xlu0 %1437, %v1628_v39  }
  0xf2   :  { %3078 = vst [vmem:[#allocation53_spill] sm:$0xff] %v2001_v63  ;;  %3079 = vst [vmem:[#allocation54_spill] sm:$0xff] %v2004_v24  ;;  %v2008_v42 = vsel %vm305_vm4, %v2004_v24, 0.0  ;;  %v2019_v63 = vsub.s32 %v1926_v47, %v1872_v6  ;;  %v3083_v24 = vmov 3  }
  0xf3   :  { %3080 = vst [vmem:[#allocation55_spill] sm:$0xff] %v2008_v42  ;;  %1415 = vset.pattern.permute.xlu1 %v3071_v19 }
  0xf4   :  { %981 = vperm.xlu1 %1415, %v1774_v0   ;;  %3082 = vst [vmem:[#allocation57_spill] sm:$0xff] %v2019_v63  ;;  %vm313_vm6 = vcmp.eq.s32.totalorder %v2019_v63, 0 }
  0xf5   :  { %v2012_v45 = vpop.permute.xlu1 %463  ;;  %v2015_v20 = vpop.permute.xlu0 %458  ;;  %885 = vperm.xlu0 %1437, %v1633_v40  }
  0xf6   :  { %3081 = vst [vmem:[#allocation56_spill] sm:$0xff] %v2012_v45  ;;  %v2023_v39 = vsel %vm309_vm5, %v2015_v20, 0.0  ;;  %vm577_vm5 = vcmp.eq.s32.totalorder %v1931_v27, 1  ;;  %v2330_v27 = vsub.s32 %v1917_v29, %v1816_v16 }
  0xf8   :  { %1416 = vset.pattern.permute.xlu1 %v3083_v24 }
  0xf9   :  { %1237 = vperm.xlu1 %1416, %v1774_v0   ;;  %v2027_v42 = vpop.permute.xlu1 %473  ;;  %881 = vperm.xlu0 %1437, %v1616_v37   ;;  %v2031_v44 = vpop.permute.xlu0 %468 }
  0xfa   :  { %3084 = vst [vmem:[#allocation58_spill] sm:$0xff] %v2027_v42  ;;  %3085 = vst [vmem:[#allocation59_spill] sm:$0xff] %v2031_v44  ;;  %v2034_v6 = vsel %vm313_vm6, %v2031_v44, 0.0 }
  0xfb   :  { %3086 = vst [vmem:[#allocation60_spill] sm:$0xff] %v2034_v6 }
  0xfd   :  { %1417 = vset.pattern.permute.xlu1 %v3071_v19  ;;  %877 = vperm.xlu0 %1437, %v1621_v38  }
  0xfe   :  { %977 = vperm.xlu1 %1417, %v1757_v61   ;;  %v2039_v40 = vpop.permute.xlu1 %609  ;;  %v2041_v0 = vpop.permute.xlu0 %1117 }
  0xff   :  { %3087 = vst [vmem:[#allocation61_spill] sm:$0xff] %v2039_v40  ;;  %3088 = vst [vmem:[#allocation62_spill] sm:$0xff] %v2041_v0 }
 0x101   :  { %873 = vperm.xlu0 %1437, %v1604_v35  }
 0x102   :  { %1418 = vset.pattern.permute.xlu1 %v3083_v24  ;;  %v2045_v37 = vpop.permute.xlu1 %613  ;;  %v2048_v44 = vpop.permute.xlu0 %1241 }
 0x103   :  { %3089 = vst [vmem:[#allocation63_spill] sm:$0xff] %v2045_v37  ;;  %1233 = vperm.xlu1 %1418, %v1757_v61   ;;  %3090 = vst [vmem:[#allocation64_spill] sm:$0xff] %v2048_v44 }
 0x105   :  { %869 = vperm.xlu0 %1437, %v1609_v36  }
 0x106   :  { %v2051_v42 = vpop.permute.xlu1 %621  ;;  %v2054_v38 = vpop.permute.xlu0 %1225 }
 0x107   :  { %3091 = vst [vmem:[#allocation65_spill] sm:$0xff] %v2051_v42  ;;  %1419 = vset.pattern.permute.xlu1 %v3065_v5  ;;  %3092 = vst [vmem:[#allocation66_spill] sm:$0xff] %v2054_v38 }
 0x108   :  { %713 = vperm.xlu1 %1419, %v1745_v59  }
 0x109   :  { %865 = vperm.xlu0 %1437, %v1592_v33  }
 0x10a   :  { %v2058_v35 = vpop.permute.xlu1 %629  ;;  %v2060_v0 = vpop.permute.xlu0 %1221 }
 0x10b   :  { %3093 = vst [vmem:[#allocation67_spill] sm:$0xff] %v2058_v35  ;;  %3094 = vst [vmem:[#allocation68_spill] sm:$0xff] %v2060_v0 }
 0x10c   :  { %1420 = vset.pattern.permute.xlu1 %v3083_v24 }
 0x10d   :  { %1229 = vperm.xlu1 %1420, %v1762_v62   ;;  %861 = vperm.xlu0 %1437, %v1597_v34  }
 0x10e   :  { %v2065_v36 = vpop.permute.xlu1 %637  ;;  %v2067_v61 = vpop.permute.xlu0 %1205 }
 0x10f   :  { %3095 = vst [vmem:[#allocation69_spill] sm:$0xff] %v2067_v61 }
 0x111   :  { %1421 = vset.pattern.permute.xlu1 %v3065_v5  ;;  %973 = vperm.xlu0 %1437, %v1762_v62  }
 0x112   :  { %709 = vperm.xlu1 %1421, %v1750_v60   ;;  %v2072_v33 = vpop.permute.xlu1 %645  ;;  %v2074_v38 = vpop.permute.xlu0 %1201 }
 0x113   :  { %3096 = vst [vmem:[#allocation70_spill] sm:$0xff] %v2074_v38 }
 0x115   :  { %969 = vperm.xlu0 %1437, %v1745_v59  }
 0x116   :  { %1422 = vset.pattern.permute.xlu1 %v3071_v19  ;;  %v2078_v0 = vpop.permute.xlu1 %653 }
 0x117   :  { %965 = vperm.xlu1 %1422, %v1750_v60   ;;  %v2081_v34 = vpop.permute.xlu0 %605 }
 0x118   :  { %3097 = vst [vmem:[#allocation71_spill] sm:$0xff] %v2081_v34 }
 0x119   :  { %953 = vperm.xlu0 %1437, %v1721_v55  }
 0x11a   :  { %v2084_v61 = vpop.permute.xlu1 %665 }
 0x11b   :  { %1423 = vset.pattern.permute.xlu1 %v3065_v5  ;;  %v2087_v62 = vpop.permute.xlu0 %617 }
 0x11c   :  { %3098 = vst [vmem:[#allocation72_spill] sm:$0xff] %v2087_v62  ;;  %705 = vperm.xlu1 %1423, %v1733_v57   ;;  %v2119_v62 = vsub.s32 %v1926_v47, %v1864_v31 }
 0x11d   :  { %949 = vperm.xlu0 %1437, %v1726_v56  }
 0x11e   :  { %v2091_v59 = vpop.permute.xlu1 %661  ;;  %3101 = vst [vmem:[#allocation75_spill] sm:$0xff] %v2119_v62  ;;  %vm311_vm7 = vcmp.eq.s32.totalorder %v2119_v62, 0  ;;  %vm599_vm8 = vcmp.eq.s32.totalorder %v2119_v62, 1 }
 0x11f   :  { %v2093_v38 = vpop.permute.xlu0 %625 }
 0x120   :  { %3099 = vst [vmem:[#allocation73_spill] sm:$0xff] %v2093_v38  ;;  %1424 = vset.pattern.permute.xlu1 %v3071_v19  ;;  %v2129_v38 = vsub.s32 %v1917_v29, %v1866_v32 }
 0x121   :  { %961 = vperm.xlu1 %1424, %v1733_v57   ;;  %933 = vperm.xlu0 %1437, %v1702_v52  }
 0x122   :  { %3102 = vst [vmem:[#allocation76_spill] sm:$0xff] %v2129_v38  ;;  %vm308_vm9 = vcmp.eq.s32.totalorder %v2129_v38, 0  ;;  %vm596_vm10 = vcmp.eq.s32.totalorder %v2129_v38, 1  ;;  %v2312_v38 = vsub.s32 %v1926_v47, %v1810_v14 }
 0x123   :  { %v2098_v60 = vpop.permute.xlu1 %1177  ;;  %v2100_v44 = vpop.permute.xlu0 %633 }
 0x124   :  { %3100 = vst [vmem:[#allocation74_spill] sm:$0xff] %v2100_v44  ;;  %v535_v44 = vsel %vm311_vm7, %v2012_v45, 0.0  ;;  %v532_v45 = vsel %vm308_vm9, %v2015_v20, 0.0 }
 0x125   :  { %1425 = vset.pattern.permute.xlu1 %v3083_v24  ;;  %929 = vperm.xlu0 %1437, %v1688_v49  }
 0x126   :  { %1217 = vperm.xlu1 %1425, %v1733_v57  }
 0x127   :  { %v2105_v34 = vpop.permute.xlu1 %1173  ;;  %v2107_v40 = vpop.permute.xlu0 %641 }
 0x129   :  { %1442 = vset.pattern.permute.xlu0 %v3083_v24 }
 0x12a   :  { %1426 = vset.pattern.permute.xlu1 %v3071_v19  ;;  %1185 = vperm.xlu0 %1442, %v1688_v49  }
 0x12b   :  { %957 = vperm.xlu1 %1426, %v1738_v58   ;;  %v2112_v37 = vpop.permute.xlu1 %1169  ;;  %v2115_v30 = vpop.permute.xlu0 %649 }
 0x12f   :  { %1427 = vset.pattern.permute.xlu1 %v3083_v24  ;;  %v2122_v57 = vpop.permute.xlu1 %1165  ;;  %v2124_v42 = vpop.permute.xlu0 %657 }
 0x130   :  { %1213 = vperm.xlu1 %1427, %v1738_v58   ;;  %v2145_v58 = vsub.s32 %v1917_v29, %v1854_v28 }
 0x132   :  { %3105 = vst [vmem:[#allocation79_spill] sm:$0xff] %v2145_v58  ;;  %vm300_vm12 = vcmp.eq.s32.totalorder %v2145_v58, 0  ;;  %vm588_vm13 = vcmp.eq.s32.totalorder %v2145_v58, 1  ;;  %v2206_v58 = vsub.s32 %v1917_v29, %v1782_v3 }
 0x133   :  { %v2132_v35 = vpop.permute.xlu1 %1161  ;;  %v2136_v31 = vpop.permute.xlu0 %721  ;;  %v524_v28 = vsel %vm300_vm12, %v1989_v43, 0.0 }
 0x134   :  { %3103 = vst [vmem:[#allocation77_spill] sm:$0xff] %v2136_v31  ;;  %1428 = vset.pattern.permute.xlu1 %v3065_v5  ;;  %v2140_v6 = vsel %vm599_vm8, %v2136_v31, %v535_v44  ;;  %v2266_v31 = vsub.s32 %v1926_v47, %v1798_v10 }
 0x135   :  { %3104 = vst [vmem:[#allocation78_spill] sm:$0xff] %v2140_v6  ;;  %693 = vperm.xlu1 %1428, %v1726_v56   ;;  %v2162_v56 = vsub.s32 %v1926_v47, %v1846_v25  ;;  %v2186_v25 = vsub.s32 %v1917_v29, %v1776_v1 }
 0x137   :  { %v2148_v32 = vpop.permute.xlu1 %1157  ;;  %v718_v62 = vpop.permute.xlu0 %717  ;;  %3108 = vst [vmem:[#allocation82_spill] sm:$0xff] %v2162_v56  ;;  %vm299_vm15 = vcmp.eq.s32.totalorder %v2162_v56, 0  ;;  %vm587_vm0 = vcmp.eq.s32.totalorder %v2162_v56, 1 }
 0x138   :  { %v2153_v63 = vsel %vm596_vm10, %v718_v62, %v532_v45  ;;  %v2156_v44 = vsel %vm597_vm11, %v718_v62, %v2023_v39 }
 0x139   :  { %3106 = vst [vmem:[#allocation80_spill] sm:$0xff] %v2153_v63  ;;  %3107 = vst [vmem:[#allocation81_spill] sm:$0xff] %v2156_v44  ;;  %1429 = vset.pattern.permute.xlu1 %v3083_v24  ;;  %v2258_v63 = vsub.s32 %v1926_v47, %v1796_v9  ;;  %v2285_v44 = vsub.s32 %v1926_v47, %v1804_v12 }
 0x13a   :  { %1209 = vperm.xlu1 %1429, %v1721_v55   ;;  %v2178_v55 = vsub.s32 %v1926_v47, %v1833_v21  ;;  %v2198_v21 = vsub.s32 %v1917_v29, %v1778_v2 }
 0x13b   :  { %v2165_v20 = vpop.permute.xlu1 %1153  ;;  %v702_v45 = vpop.permute.xlu0 %701 }
 0x13c   :  { %v2170_v39 = vsel %vm588_vm13, %v702_v45, %v524_v28  ;;  %v2173_v62 = vsel %vm589_vm14, %v702_v45, %v1993_v46  ;;  %3111 = vst [vmem:[#allocation85_spill] sm:$0xff] %v2178_v55  ;;  %v2190_v46 = vsub.s32 %v1926_v47, %v1776_v1  ;;  %v523_v28 = vsel %vm299_vm15, %v1972_v26, 0.0  ;;  %3113 = vst [vmem:[#allocation87_spill] sm:$0xff] %v2198_v21 }
 0x13d   :  { %3109 = vst [vmem:[#allocation83_spill] sm:$0xff] %v2170_v39  ;;  %3110 = vst [vmem:[#allocation84_spill] sm:$0xff] %v2173_v62  ;;  %v2202_v39 = vsub.s32 %v1926_v47, %v1778_v2  ;;  %v2213_v26 = vsub.s32 %v1926_v47, %v1782_v3  ;;  %v2217_v62 = vsub.s32 %v1917_v29, %v1784_v4  ;;  %vm291_vm1 = vcmp.eq.s32.totalorder %v2178_v55, 0 }
 0x13e   :  { %1430 = vset.pattern.permute.xlu1 %v3065_v5  ;;  %v2225_v2 = vsub.s32 %v1917_v29, %v1790_v7  ;;  %v2233_v3 = vsub.s32 %v1917_v29, %v1792_v8  ;;  %v515_v56 = vsel %vm291_vm1, %v1943_v50, 0.0  ;;  %vm579_vm2 = vcmp.eq.s32.totalorder %v2178_v55, 1 }
 0x13f   :  { %689 = vperm.xlu1 %1430, %v1709_v53   ;;  %v2182_v43 = vpop.permute.xlu1 %1149  ;;  %v2194_v45 = vpop.permute.xlu0 %697  ;;  %3114 = vst [vmem:[#allocation88_spill] sm:$0xff] %v2202_v39  ;;  %v2273_v55 = vsub.s32 %v1917_v29, %v1802_v11 }
 0x140   :  { %3112 = vst [vmem:[#allocation86_spill] sm:$0xff] %v2194_v45  ;;  %v2209_v1 = vsel %vm587_vm0, %v2194_v45, %v523_v28  ;;  %v2229_v28 = vsub.s32 %v1926_v47, %v1790_v7  ;;  %v2237_v45 = vsub.s32 %v1917_v29, %v1835_v22  ;;  %v2249_v7 = vsub.s32 %v1917_v29, %v1796_v9 }
 0x141   :  { %3115 = vst [vmem:[#allocation89_spill] sm:$0xff] %v2209_v1  ;;  %v2245_v1 = vsub.s32 %v1926_v47, %v1792_v8  ;;  %v2262_v8 = vsub.s32 %v1917_v29, %v1798_v10  ;;  %v2281_v9 = vsub.s32 %v1917_v29, %v1804_v12  ;;  %v2289_v10 = vsub.s32 %v1917_v29, %v1808_v13 }
 0x142   :  { %3117 = vst [vmem:[#allocation91_spill] sm:$0xff] %v2237_v45  ;;  %vm288_vm3 = vcmp.eq.s32.totalorder %v2237_v45, 0  ;;  %vm576_vm4 = vcmp.eq.s32.totalorder %v2237_v45, 1  ;;  %v2326_v45 = vsub.s32 %v1926_v47, %v1814_v15 }
 0x143   :  { %1431 = vset.pattern.permute.xlu1 %v3071_v19  ;;  %v2241_v4 = vpop.permute.xlu1 %1145  ;;  %v2253_v22 = vpop.permute.xlu0 %681  ;;  %v512_v12 = vsel %vm288_vm3, %v1946_v51, 0.0  ;;  %v2322_v51 = vsub.s32 %v1917_v29, %v1814_v15  ;;  %v3122_v15 = vld [vmem:[#allocation34_spill] sm:$0xff] }
 0x144   :  { %3118 = vst [vmem:[#allocation92_spill] sm:$0xff] %v2253_v22  ;;  %945 = vperm.xlu1 %1431, %v1709_v53   ;;  %v2269_v50 = vsel %vm579_vm2, %v2253_v22, %v515_v56  ;;  %v2277_v53 = vsub.s32 %v1926_v47, %v1802_v11  ;;  %v186_v56 = vsub.s32 %v1917_v29, %v1820_v17 }
 0x145   :  { %3119 = vst [vmem:[#allocation93_spill] sm:$0xff] %v2269_v50  ;;  %v187_v22 = vsub.s32 %v1926_v47, %v1820_v17  ;;  %v2300_v50 = vsub.s32 %v1926_v47, %v1808_v13  ;;  %v2308_v17 = vsub.s32 %v1917_v29, %v1810_v14  ;;  %v2334_v14 = vsub.s32 %v1926_v47, %v1816_v16 }
 0x146   :  { %vm282_vm6 = vcmp.eq.s32.totalorder %v186_v56, 0  ;;  %vm570_vm8 = vcmp.eq.s32.totalorder %v186_v56, 1  ;;  %vm826_vm10 = vcmp.eq.s32.totalorder %v186_v56, 16  ;;  %vm1082_vm13 = vcmp.eq.s32.totalorder %v186_v56, 17 }
 0x147   :  { %v2296_v11 = vpop.permute.xlu1 %1141  ;;  %v678_v41 = vpop.permute.xlu0 %677  ;;  %vm283_vm7 = vcmp.eq.s32.totalorder %v187_v22, 0  ;;  %vm571_vm9 = vcmp.eq.s32.totalorder %v187_v22, 1  ;;  %vm827_vm11 = vcmp.eq.s32.totalorder %v187_v22, 16  ;;  %vm1083_vm12 = vcmp.eq.s32.totalorder %v187_v22, 17 }
 0x148   :  { %1432 = vset.pattern.permute.xlu1 %v3065_v5  ;;  %v2314_v39 = vsel %vm576_vm4, %v678_v41, %v512_v12  ;;  %v2317_v13 = vsel %vm577_vm5, %v678_v41, %v1950_v48  ;;  %v184_v48 = vsub.s32 %v1917_v29, %v1822_v18  ;;  %v185_v41 = vsub.s32 %v1926_v47, %v1822_v18 }
 0x149   :  { %3120 = vst [vmem:[#allocation94_spill] sm:$0xff] %v2314_v39  ;;  %3121 = vst [vmem:[#allocation95_spill] sm:$0xff] %v2317_v13  ;;  %685 = vperm.xlu1 %1432, %v1714_v54   ;;  %v506_v39 = vsel %vm282_vm6, %v3122_v15, 0.0  ;;  %v507_v13 = vsel %vm283_vm7, %v3122_v15, 0.0  ;;  %vm278_vm6 = vcmp.eq.s32.totalorder %v2322_v51, 0  ;;  %vm279_vm7 = vcmp.eq.s32.totalorder %v2326_v45, 0 }
 0x14a   :  { %v762_v21 = vsel %vm570_vm8, %v2084_v61, %v506_v39  ;;  %v763_v16 = vsel %vm571_vm9, %v2084_v61, %v507_v13  ;;  %vm280_vm14 = vcmp.eq.s32.totalorder %v184_v48, 0  ;;  %vm281_vm15 = vcmp.eq.s32.totalorder %v185_v41, 0  ;;  %v3123_v61 = vld [vmem:[#allocation35_spill] sm:$0xff] }
 0x14b   :  { %v2340_v12 = vpop.permute.xlu1 %1137  ;;  %v504_v13 = vsel %vm280_vm14, %v3123_v61, 0.0  ;;  %v505_v23 = vsel %vm281_vm15, %v3123_v61, 0.0  ;;  %vm568_vm0 = vcmp.eq.s32.totalorder %v184_v48, 1  ;;  %vm569_vm1 = vcmp.eq.s32.totalorder %v185_v41, 1 }
 0x14c   :  { %v922_v29 = vpop.permute.xlu0 %921  ;;  %vm824_vm2 = vcmp.eq.s32.totalorder %v184_v48, 16  ;;  %vm825_vm3 = vcmp.eq.s32.totalorder %v185_v41, 16  ;;  %vm1081_vm4 = vcmp.eq.s32.totalorder %v185_v41, 17  ;;  %vm1080_vm5 = vcmp.eq.s32.totalorder %v184_v48, 17 }
 0x14d   :  { %1434 = vset.pattern.permute.xlu1 %v3071_v19  ;;  %v1018_v18 = vsel %vm826_vm10, %v922_v29, %v762_v21  ;;  %v1019_v47 = vsel %vm827_vm11, %v922_v29, %v763_v16  ;;  %v760_v21 = vsel %vm568_vm0, %v2091_v59, %v504_v13  ;;  %v761_v29 = vsel %vm569_vm1, %v2091_v59, %v505_v23  ;;  %v3124_v59 = vld [vmem:[#allocation31_spill] sm:$0xff] }
 0x14e   :  { %941 = vperm.xlu1 %1434, %v1714_v54   ;;  %v1275_v6 = vsel %vm1083_vm12, %v2098_v60, %v1019_v47  ;;  %v1274_v39 = vsel %vm1082_vm13, %v2098_v60, %v1018_v18  ;;  %v502_v60 = vsel %vm278_vm6, %v3124_v59, 0.0  ;;  %v503_v18 = vsel %vm279_vm7, %v3124_v59, 0.0 }
 0x14f   :  { %v2348_v15 = vpop.permute.xlu1 %1133  ;;  %1312 = vmatprep.subr.mxu0 %v1275_v6  ;;  %vm566_vm8 = vcmp.eq.s32.totalorder %v2322_v51, 1  ;;  %vm567_vm9 = vcmp.eq.s32.totalorder %v2326_v45, 1  ;;  %vm822_vm10 = vcmp.eq.s32.totalorder %v2322_v51, 16  ;;  %vm823_vm11 = vcmp.eq.s32.totalorder %v2326_v45, 16 }
 0x150   :  { %1313 = vmatpush1.msra.mxu0 %v1274_v39  ;;  %v918_v22 = vpop.permute.xlu0 %917  ;;  %v758_v48 = vsel %vm566_vm8, %v2124_v42, %v502_v60  ;;  %v759_v41 = vsel %vm567_vm9, %v2124_v42, %v503_v18  ;;  %vm1079_vm12 = vcmp.eq.s32.totalorder %v2326_v45, 17  ;;  %vm1078_vm13 = vcmp.eq.s32.totalorder %v2322_v51, 17  ;;  %v3126_v45 = vld [vmem:[#allocation5_spill] sm:$0xff] }
 0x151   :  { %v1016_v56 = vsel %vm824_vm2, %v918_v22, %v760_v21  ;;  %v1017_v16 = vsel %vm825_vm3, %v918_v22, %v761_v29  ;;  %vm276_vm14 = vcmp.eq.s32.totalorder %v2330_v27, 0  ;;  %vm277_vm15 = vcmp.eq.s32.totalorder %v2334_v14, 0  ;;  %v3125_v21 = vld [vmem:[#allocation32_spill] sm:$0xff]  ;;  %v3127_v60 = vld [vmem:[#allocation29_spill] sm:$0xff] }
 0x152   :  { %1435 = vset.pattern.permute.xlu1 %v3083_v24  ;;  %v1273_v23 = vsel %vm1081_vm4, %v2105_v34, %v1017_v16  ;;  %v1272_v47 = vsel %vm1080_vm5, %v2105_v34, %v1016_v56  ;;  %v500_v29 = vsel %vm276_vm14, %v3125_v21, 0.0  ;;  %v501_v22 = vsel %vm277_vm15, %v3125_v21, 0.0 }
 0x153   :  { %1197 = vperm.xlu1 %1435, %v1714_v54   ;;  %v2360_v6 = vpop.permute.xlu1 %1129  ;;  %1314 = vmatprep.subr.mxu0 %v1273_v23  ;;  %vm564_vm0 = vcmp.eq.s32.totalorder %v2330_v27, 1  ;;  %vm565_vm1 = vcmp.eq.s32.totalorder %v2334_v14, 1  ;;  %vm820_vm2 = vcmp.eq.s32.totalorder %v2330_v27, 16  ;;  %vm821_vm3 = vcmp.eq.s32.totalorder %v2334_v14, 16 }
 0x154   :  { %1315 = vmatpush1.msra.mxu0 %v1272_v47  ;;  %v914_v54 = vpop.permute.xlu0 %913  ;;  %v756_v51 = vsel %vm564_vm0, %v2078_v0, %v500_v29  ;;  %v757_v56 = vsel %vm565_vm1, %v2078_v0, %v501_v22  ;;  %vm1077_vm4 = vcmp.eq.s32.totalorder %v2334_v14, 17  ;;  %vm1076_vm5 = vcmp.eq.s32.totalorder %v2330_v27, 17 }
 0x155   :  { %v1014_v34 = vsel %vm822_vm10, %v914_v54, %v758_v48  ;;  %v1015_v39 = vsel %vm823_vm11, %v914_v54, %v759_v41  ;;  %vm270_vm6 = vcmp.eq.s32.totalorder %v2273_v55, 0  ;;  %vm274_vm7 = vcmp.eq.s32.totalorder %v2289_v10, 0 }
 0x156   :  { %v1271_v42 = vsel %vm1079_vm12, %v2112_v37, %v1015_v39  ;;  %v1270_v13 = vsel %vm1078_vm13, %v2112_v37, %v1014_v34  ;;  %vm275_vm8 = vcmp.eq.s32.totalorder %v2300_v50, 0  ;;  %v498_v18 = vsel %vm274_vm7, %v3127_v60, 0.0  ;;  %v3128_v39 = vld [vmem:[#allocation30_spill] sm:$0xff] }
 0x157   :  { %1436 = vset.pattern.permute.xlu1 %v3071_v19  ;;  %v2377_v61 = vpop.permute.xlu1 %1125  ;;  %1316 = vmatprep.subr.mxu0 %v1271_v42  ;;  %v499_v48 = vsel %vm275_vm8, %v3127_v60, 0.0  ;;  %vm562_vm9 = vcmp.eq.s32.totalorder %v2289_v10, 1  ;;  %vm563_vm10 = vcmp.eq.s32.totalorder %v2300_v50, 1  ;;  %vm818_vm11 = vcmp.eq.s32.totalorder %v2289_v10, 16 }
 0x158   :  { %937 = vperm.xlu1 %1436, %v3126_v45   ;;  %1317 = vmatpush1.msra.mxu0 %v1270_v13  ;;  %v910_v37 = vpop.permute.xlu0 %909  ;;  %v754_v27 = vsel %vm562_vm9, %v2115_v30, %v498_v18  ;;  %v755_v14 = vsel %vm563_vm10, %v2115_v30, %v499_v48  ;;  %vm819_vm12 = vcmp.eq.s32.totalorder %v2300_v50, 16  ;;  %vm1075_vm13 = vcmp.eq.s32.totalorder %v2300_v50, 17 }
 0x159   :  { %v1012_v16 = vsel %vm820_vm2, %v910_v37, %v756_v51  ;;  %v1013_v23 = vsel %vm821_vm3, %v910_v37, %v757_v56  ;;  %vm1074_vm14 = vcmp.eq.s32.totalorder %v2289_v10, 17  ;;  %vm272_vm15 = vcmp.eq.s32.totalorder %v2308_v17, 0  ;;  %v3129_v51 = vld [vmem:[#allocation27_spill] sm:$0xff] }
 0x15a   :  { %v1269_v0 = vsel %vm1077_vm4, %v2122_v57, %v1013_v23  ;;  %v1268_v59 = vsel %vm1076_vm5, %v2122_v57, %v1012_v16  ;;  %vm273_vm0 = vcmp.eq.s32.totalorder %v2312_v38, 0  ;;  %v496_v42 = vsel %vm272_vm15, %v3128_v39, 0.0 }
 0x15b   :  { %v2395_v47 = vpop.permute.xlu1 %1121  ;;  %1318 = vmatprep.subr.mxu0 %v1269_v0  ;;  %v497_v13 = vsel %vm273_vm0, %v3128_v39, 0.0  ;;  %vm560_vm1 = vcmp.eq.s32.totalorder %v2308_v17, 1  ;;  %vm561_vm2 = vcmp.eq.s32.totalorder %v2312_v38, 1  ;;  %vm816_vm3 = vcmp.eq.s32.totalorder %v2308_v17, 16 }
 0x15c   :  { %1438 = vset.pattern.permute.xlu1 %v3083_v24  ;;  %1319 = vmatpush1.msra.mxu0 %v1268_v59  ;;  %v906_v57 = vpop.permute.xlu0 %905  ;;  %v752_v10 = vsel %vm560_vm1, %v2072_v33, %v496_v42  ;;  %v753_v21 = vsel %vm561_vm2, %v2072_v33, %v497_v13  ;;  %vm817_vm4 = vcmp.eq.s32.totalorder %v2312_v38, 16  ;;  %vm1073_vm5 = vcmp.eq.s32.totalorder %v2312_v38, 17  ;;  %v3130_v59 = vld [vmem:[#allocation28_spill] sm:$0xff] }
 0x15d   :  { %1193 = vperm.xlu1 %1438, %v3126_v45   ;;  %v1010_v41 = vsel %vm818_vm11, %v906_v57, %v754_v27  ;;  %v1011_v54 = vsel %vm819_vm12, %v906_v57, %v755_v14  ;;  %vm1072_vm7 = vcmp.eq.s32.totalorder %v2308_v17, 17  ;;  %vm266_vm8 = vcmp.eq.s32.totalorder %v2249_v7, 0  ;;  %v3131_v14 = vld [vmem:[#allocation57_spill] sm:$0xff] }
 0x15e   :  { %v1267_v30 = vsel %vm1075_vm13, %v2132_v35, %v1011_v54  ;;  %v1266_v34 = vsel %vm1074_vm14, %v2132_v35, %v1010_v41  ;;  %vm267_vm9 = vcmp.eq.s32.totalorder %v2258_v63, 0  ;;  %vm271_vm10 = vcmp.eq.s32.totalorder %v2277_v53, 0  ;;  %v3133_v54 = vld [vmem:[#allocation25_spill] sm:$0xff] }
 0x15f   :  { %1320 = vmatprep.subr.mxu0 %v1267_v30  ;;  %vm268_vm11 = vcmp.eq.s32.totalorder %v2281_v9, 0  ;;  %v495_v38 = vsel %vm271_vm10, %v3129_v51, 0.0  ;;  %vm558_vm12 = vcmp.eq.s32.totalorder %v2273_v55, 1  ;;  %vm559_vm13 = vcmp.eq.s32.totalorder %v2277_v53, 1 }
 0x160   :  { %v2419_v50 = vpop.permute.xlu1 %729  ;;  %1321 = vmatpush1.msra.mxu0 %v1266_v34  ;;  %v902_v35 = vpop.permute.xlu0 %901  ;;  %vm264_vm14 = vcmp.eq.s32.totalorder %v2262_v8, 0  ;;  %v751_v56 = vsel %vm559_vm13, %v2107_v40, %v495_v38  ;;  %vm814_vm15 = vcmp.eq.s32.totalorder %v2273_v55, 16  ;;  %vm815_vm0 = vcmp.eq.s32.totalorder %v2277_v53, 16 }
 0x161   :  { %1439 = vset.pattern.permute.xlu1 %v3065_v5  ;;  %v1008_v29 = vsel %vm816_vm3, %v902_v35, %v752_v10  ;;  %v1009_v22 = vsel %vm817_vm4, %v902_v35, %v753_v21  ;;  %vm1070_vm1 = vcmp.eq.s32.totalorder %v2273_v55, 17  ;;  %vm269_vm2 = vcmp.eq.s32.totalorder %v2285_v44, 0 }
 0x162   :  { %673 = vperm.xlu1 %1439, %v1688_v49   ;;  %v1265_v33 = vsel %vm1073_vm5, %v2148_v32, %v1009_v22  ;;  %v1264_v45 = vsel %vm1072_vm7, %v2148_v32, %v1008_v29  ;;  %v494_v49 = vsel %vm270_vm6, %v3129_v51, 0.0  ;;  %vm1071_vm6 = vcmp.eq.s32.totalorder %v2277_v53, 17  ;;  %v3135_v22 = vld [vmem:[#allocation26_spill] sm:$0xff] }
 0x163   :  { %1322 = vmatprep.subr.mxu0 %v1265_v33  ;;  %v750_v17 = vsel %vm558_vm12, %v2107_v40, %v494_v49  ;;  %vm556_vm3 = vcmp.eq.s32.totalorder %v2281_v9, 1  ;;  %v492_v60 = vsel %vm268_vm11, %v3130_v59, 0.0  ;;  %v493_v18 = vsel %vm269_vm2, %v3130_v59, 0.0 }
 0x164   :  { %1323 = vmatpush1.msra.mxu0 %v1264_v45  ;;  %v898_v32 = vpop.permute.xlu0 %897  ;;  %vm557_vm4 = vcmp.eq.s32.totalorder %v2285_v44, 1  ;;  %vm812_vm5 = vcmp.eq.s32.totalorder %v2281_v9, 16  ;;  %v748_v55 = vsel %vm556_vm3, %v2065_v36, %v492_v60  ;;  %vm813_vm7 = vcmp.eq.s32.totalorder %v2285_v44, 16  ;;  %v3136_v45 = vld [vmem:[#allocation67_spill] sm:$0xff] }
 0x165   :  { %v2446_v37 = vpop.permute.xlu1 %985  ;;  %v1006_v16 = vsel %vm814_vm15, %v898_v32, %v750_v17  ;;  %v1007_v23 = vsel %vm815_vm0, %v898_v32, %v751_v56  ;;  %v749_v53 = vsel %vm557_vm4, %v2065_v36, %v493_v18  ;;  %vm1069_vm10 = vcmp.eq.s32.totalorder %v2285_v44, 17  ;;  %v3132_v36 = vld [vmem:[#allocation60_spill] sm:$0xff]  ;;  %v3137_v32 = vld [vmem:[#allocation23_spill] sm:$0xff] }
 0x166   :  { %1440 = vset.pattern.permute.xlu1 %v3083_v24  ;;  %v1263_v40 = vsel %vm1071_vm6, %v2165_v20, %v1007_v23  ;;  %v1262_v0 = vsel %vm1070_vm1, %v2165_v20, %v1006_v16  ;;  %vm601_vm11 = vcmp.eq.s32.totalorder %v3131_v14, 1  ;;  %vm1068_vm12 = vcmp.eq.s32.totalorder %v2281_v9, 17  ;;  %v3138_v23 = vld [vmem:[#allocation73_spill] sm:$0xff] }
 0x167   :  { %1189 = vperm.xlu1 %1440, %v1702_v52   ;;  %1324 = vmatprep.subr.mxu0 %v1263_v40  ;;  %vm262_vm13 = vcmp.eq.s32.totalorder %v2225_v2, 0  ;;  %vm263_vm15 = vcmp.eq.s32.totalorder %v2229_v28, 0  ;;  %vm265_vm0 = vcmp.eq.s32.totalorder %v2266_v31, 0  ;;  %v490_v30 = vsel %vm266_vm8, %v3133_v54, 0.0 }
 0x168   :  { %1325 = vmatpush1.msra.mxu0 %v1262_v0  ;;  %v894_v52 = vpop.permute.xlu0 %893  ;;  %v491_v9 = vsel %vm267_vm9, %v3133_v54, 0.0  ;;  %vm554_vm6 = vcmp.eq.s32.totalorder %v2249_v7, 1  ;;  %vm555_vm1 = vcmp.eq.s32.totalorder %v2258_v63, 1  ;;  %vm260_vm2 = vcmp.eq.s32.totalorder %v2233_v3, 0 }
 0x169   :  { %v1004_v20 = vsel %vm812_vm5, %v894_v52, %v748_v55  ;;  %v1005_v48 = vsel %vm813_vm7, %v894_v52, %v749_v53  ;;  %vm261_vm3 = vcmp.eq.s32.totalorder %v2245_v1, 0  ;;  %vm810_vm8 = vcmp.eq.s32.totalorder %v2249_v7, 16  ;;  %v3139_v52 = vld [vmem:[#allocation24_spill] sm:$0xff] }
 0x16a   :  { %v2466_v27 = vpop.permute.xlu1 %725  ;;  %v1261_v44 = vsel %vm1069_vm10, %v2182_v43, %v1005_v48  ;;  %v1260_v41 = vsel %vm1068_vm12, %v2182_v43, %v1004_v20  ;;  %v3134_v43 = vld [vmem:[#allocation74_spill] sm:$0xff]  ;;  %vm811_vm9 = vcmp.eq.s32.totalorder %v2258_v63, 16  ;;  %vm1067_vm4 = vcmp.eq.s32.totalorder %v2258_v63, 17 }
 0x16b   :  { %v793_v57 = vsel %vm601_vm11, %v2466_v27, %v3132_v36  ;;  %1441 = vset.pattern.permute.xlu1 %v3065_v5  ;;  %1326 = vmatprep.subr.mxu0 %v1261_v44  ;;  %v1445_v5 = vld [vmem:[%s2925_s1 + $0x80] sm:$0xff]  ;;  %v746_v34 = vsel %vm554_vm6, %v3134_v43, %v490_v30  ;;  %v747_v39 = vsel %vm555_vm1, %v3134_v43, %v491_v9  ;;  %vm1066_vm5 = vcmp.eq.s32.totalorder %v2249_v7, 17  ;;  %v3143_v30 = vld [vmem:[#allocation78_spill] sm:$0xff] }
 0x16c   :  { %669 = vperm.xlu1 %1441, %v1445_v5   ;;  %1327 = vmatpush1.msra.mxu0 %v1260_v41  ;;  %v890_v42 = vpop.permute.xlu0 %889  ;;  %vm552_vm7 = vcmp.eq.s32.totalorder %v2262_v8, 1  ;;  %vm857_vm10 = vcmp.eq.s32.totalorder %v3131_v14, 16  ;;  %v488_v33 = vsel %vm264_vm14, %v3135_v22, 0.0  ;;  %v489_v63 = vsel %vm265_vm0, %v3135_v22, 0.0 }
 0x16d   :  { %v1002_v13 = vsel %vm810_vm8, %v890_v42, %v746_v34  ;;  %v1003_v10 = vsel %vm811_vm9, %v890_v42, %v747_v39  ;;  %vm553_vm11 = vcmp.eq.s32.totalorder %v2266_v31, 1  ;;  %v744_v51 = vsel %vm552_vm7, %v3136_v45, %v488_v33  ;;  %v3146_v39 = vld [vmem:[#allocation88_spill] sm:$0xff] }
 0x16e   :  { %v1259_v35 = vsel %vm1067_vm4, %v2241_v4, %v1003_v10  ;;  %v1258_v29 = vsel %vm1066_vm5, %v2241_v4, %v1002_v13  ;;  %v745_v49 = vsel %vm553_vm11, %v3136_v45, %v489_v63  ;;  %vm808_vm12 = vcmp.eq.s32.totalorder %v2262_v8, 16  ;;  %v3147_v42 = vld [vmem:[#allocation72_spill] sm:$0xff] }
 0x16f   :  { %v2498_v21 = vpop.permute.xlu1 %981  ;;  %1328 = vmatprep.subr.mxu0 %v1259_v35  ;;  %vm809_vm14 = vcmp.eq.s32.totalorder %v2266_v31, 16  ;;  %vm1065_vm0 = vcmp.eq.s32.totalorder %v2266_v31, 17  ;;  %vm1064_vm6 = vcmp.eq.s32.totalorder %v2262_v8, 17  ;;  %vm258_vm1 = vcmp.eq.s32.totalorder %v2206_v58, 0 }
 0x170   :  { %v1049_v7 = vsel %vm857_vm10, %v2498_v21, %v793_v57  ;;  %1443 = vset.pattern.permute.xlu1 %v3071_v19  ;;  %1329 = vmatpush1.msra.mxu0 %v1258_v29  ;;  %v886_v4 = vpop.permute.xlu0 %885  ;;  %vm259_vm8 = vcmp.eq.s32.totalorder %v2213_v26, 0  ;;  %vm550_vm9 = vcmp.eq.s32.totalorder %v2225_v2, 1  ;;  %vm551_vm4 = vcmp.eq.s32.totalorder %v2229_v28, 1  ;;  %v3142_v57 = vld [vmem:[#allocation75_spill] sm:$0xff] }
 0x171   :  { %925 = vperm.xlu1 %1443, %v1445_v5   ;;  %v1000_v38 = vsel %vm808_vm12, %v886_v4, %v744_v51  ;;  %v1001_v17 = vsel %vm809_vm14, %v886_v4, %v745_v49  ;;  %v486_v16 = vsel %vm262_vm13, %v3137_v32, 0.0  ;;  %v487_v31 = vsel %vm263_vm15, %v3137_v32, 0.0  ;;  %v3149_v51 = vld [vmem:[#allocation33_spill] sm:$0xff] }
 0x172   :  { %v1257_v19 = vsel %vm1065_vm0, %v2296_v11, %v1001_v17  ;;  %v1256_v56 = vsel %vm1064_vm6, %v2296_v11, %v1000_v38  ;;  %vm546_vm5 = vcmp.eq.s32.totalorder %v2206_v58, 1  ;;  %vm547_vm7 = vcmp.eq.s32.totalorder %v2213_v26, 1  ;;  %v1311_v11 = vld [vmem:[%s2926_s2 + $0x8] sm:$0xff]  ;;  %v3151_v38 = vld [vmem:[#allocation22_spill] sm:$0xff]  ;;  %v3153_v32 = vld [vmem:[#allocation17_spill] sm:$0xff] }
 0x173   :  { %1330 = vmatprep.subr.mxu0 %v1257_v19  ;;  %vm806_vm10 = vcmp.eq.s32.totalorder %v2225_v2, 16  ;;  %vm1113_vm11 = vcmp.eq.s32.totalorder %v3131_v14, 17  ;;  %v742_v40 = vsel %vm550_vm9, %v3138_v23, %v486_v16  ;;  %v743_v0 = vsel %vm551_vm4, %v3138_v23, %v487_v31  ;;  %1376 = vmatprep.mubr.f32.mxu0 %v1311_v11  ;;  %v3152_v19 = vld [vmem:[#allocation15_spill] sm:$0xff] }
 0x174   :  { %v2532_v8 = vpop.permute.xlu1 %1237  ;;  %1331 = vmatpush1.msra.mxu0 %v1256_v56  ;;  %vm807_vm13 = vcmp.eq.s32.totalorder %v2229_v28, 16  ;;  %v882_v59 = vpop.permute.xlu0 %881  ;;  %vm1063_vm15 = vcmp.eq.s32.totalorder %v2229_v28, 17  ;;  %vm1062_vm12 = vcmp.eq.s32.totalorder %v2225_v2, 17  ;;  %vm256_vm14 = vcmp.eq.s32.totalorder %v2186_v25, 0  ;;  %v3140_v28 = vld [vmem:[#allocation90_spill] sm:$0xff]  ;;  %v3154_v31 = vld [vmem:[#allocation63_spill] sm:$0xff] }
 0x175   :  { %1444 = vset.pattern.permute.xlu1 %v3083_v24  ;;  %v2544_v60 = vsel %vm1113_vm11, %v2532_v8, %v1049_v7  ;;  %v998_v18 = vsel %vm806_vm10, %v882_v59, %v742_v40  ;;  %v999_v55 = vsel %vm807_vm13, %v882_v59, %v743_v0  ;;  %vm257_vm0 = vcmp.eq.s32.totalorder %v2190_v46, 0  ;;  %v3157_v0 = vld [vmem:[#allocation16_spill] sm:$0xff] }
 0x176   :  { %1181 = vperm.xlu1 %1444, %v1445_v5   ;;  %vm548_vm6 = vcmp.eq.s32.totalorder %v2233_v3, 1  ;;  %vm549_vm9 = vcmp.eq.s32.totalorder %v2245_v1, 1  ;;  %v1255_v24 = vsel %vm1063_vm15, %v2340_v12, %v999_v55  ;;  %v1254_v53 = vsel %vm1062_vm12, %v2340_v12, %v998_v18  ;;  %v3141_v12 = vld [vmem:[#allocation65_spill] sm:$0xff] }
 0x177   :  { %v484_v20 = vsel %vm260_vm2, %v3139_v52, 0.0  ;;  %v485_v2 = vsel %vm261_vm3, %v3139_v52, 0.0  ;;  %1332 = vmatprep.subr.mxu0 %v1255_v24  ;;  %vm804_vm11 = vcmp.eq.s32.totalorder %v2233_v3, 16  ;;  %vm805_vm13 = vcmp.eq.s32.totalorder %v2245_v1, 16 }
 0x178   :  { %v740_v48 = vsel %vm548_vm6, %v3141_v12, %v484_v20  ;;  %v741_v14 = vsel %vm549_vm9, %v3141_v12, %v485_v2  ;;  %1333 = vmatpush1.msra.mxu0 %v1254_v53  ;;  %v878_v36 = vpop.permute.xlu0 %877  ;;  %vm855_vm2 = vcmp.eq.s32.totalorder %v3142_v57, 16  ;;  %vm1061_vm3 = vcmp.eq.s32.totalorder %v2245_v1, 17  ;;  %v3144_v1 = vld [vmem:[#allocation21_spill] sm:$0xff]  ;;  %v3160_v2 = vld [vmem:[#allocation19_spill] sm:$0xff] }
 0x179   :  { %v2569_v44 = vpop.permute.xlu1 %977  ;;  %vm801_vm4 = vcmp.eq.s32.totalorder %v2190_v46, 16  ;;  %v996_v41 = vsel %vm804_vm11, %v878_v36, %v740_v48  ;;  %v997_v54 = vsel %vm805_vm13, %v878_v36, %v741_v14  ;;  %vm1060_vm6 = vcmp.eq.s32.totalorder %v2233_v3, 17 }
 0x17a   :  { %v1047_v9 = vsel %vm855_vm2, %v2569_v44, %v3143_v30  ;;  %vm1057_vm9 = vcmp.eq.s32.totalorder %v2190_v46, 17  ;;  %v1253_v5 = vsel %vm1061_vm3, %v2348_v15, %v997_v54  ;;  %v1252_v43 = vsel %vm1060_vm6, %v2348_v15, %v996_v41  ;;  %v3145_v15 = vld [vmem:[#allocation87_spill] sm:$0xff]  ;;  %v3165_v41 = vld [vmem:[#allocation50_spill] sm:$0xff] }
 0x17b   :  { %vm802_vm15 = vcmp.eq.s32.totalorder %v2206_v58, 16  ;;  %vm803_vm10 = vcmp.eq.s32.totalorder %v2213_v26, 16  ;;  %v482_v34 = vsel %vm258_vm1, %v3144_v1, 0.0  ;;  %v483_v3 = vsel %vm259_vm8, %v3144_v1, 0.0  ;;  %1334 = vmatprep.subr.mxu0 %v1253_v5 }
 0x17c   :  { %vm542_vm11 = vcmp.eq.s32.totalorder %v2217_v62, 1  ;;  %vm543_vm13 = vcmp.eq.s32.totalorder %v3140_v28, 1  ;;  %vm1059_vm2 = vcmp.eq.s32.totalorder %v2213_v26, 17  ;;  %vm1058_vm3 = vcmp.eq.s32.totalorder %v2206_v58, 17  ;;  %1335 = vmatpush1.msra.mxu0 %v1252_v43  ;;  %v874_v35 = vpop.permute.xlu0 %873  ;;  %v3148_v58 = vld [vmem:[#allocation14_spill] sm:$0xff]  ;;  %v3150_v26 = vld [vmem:[#allocation36_spill] sm:$0xff] }
 0x17d   :  { %vm252_vm6 = vcmp.eq.s32.totalorder %v3145_v15, 0  ;;  %v738_v13 = vsel %vm546_vm5, %v3147_v42, %v482_v34  ;;  %v739_v10 = vsel %vm547_vm7, %v3147_v42, %v483_v3  ;;  %vm798_vm1 = vcmp.eq.s32.totalorder %v2217_v62, 16  ;;  %v3166_v43 = vld [vmem:[#allocation20_spill] sm:$0xff]  ;;  %v3168_v3 = vld [vmem:[#allocation58_spill] sm:$0xff] }
 0x17e   :  { %vm799_vm8 = vcmp.eq.s32.totalorder %v3140_v28, 16  ;;  %v994_v29 = vsel %vm802_vm15, %v874_v35, %v738_v13  ;;  %v995_v22 = vsel %vm803_vm10, %v874_v35, %v739_v10  ;;  %v2607_v33 = vpop.permute.xlu1 %1233  ;;  %vm1055_vm5 = vcmp.eq.s32.totalorder %v3140_v28, 17  ;;  %v3170_v13 = vld [vmem:[#allocation71_spill] sm:$0xff] }
 0x17f   :  { %vm1111_vm12 = vcmp.eq.s32.totalorder %v3142_v57, 17  ;;  %v1251_v63 = vsel %vm1059_vm2, %v2360_v6, %v995_v22  ;;  %v1250_v7 = vsel %vm1058_vm3, %v2360_v6, %v994_v29  ;;  %vm1054_vm7 = vcmp.eq.s32.totalorder %v2217_v62, 17 }
 0x180   :  { %v2615_v45 = vsel %vm1111_vm12, %v2607_v33, %v1047_v9  ;;  %v2619_v49 = vsub.s32 %v3149_v51, %v3148_v58  ;;  %v2623_v4 = vsub.s32 %v3150_v26, %v3148_v58  ;;  %v480_v17 = vsel %vm256_vm14, %v3151_v38, 0.0  ;;  %1336 = vmatprep.subr.mxu0 %v1251_v63  ;;  %v870_v40 = vpop.permute.xlu0 %869 }
 0x181   :  { %v481_v6 = vsel %vm257_vm0, %v3151_v38, 0.0  ;;  %vm540_vm10 = vcmp.eq.s32.totalorder %v3145_v15, 1  ;;  %vm541_vm15 = vcmp.eq.s32.totalorder %v3146_v39, 1  ;;  %v2635_v56 = vsub.s32 %v3149_v51, %v3152_v19  ;;  %1337 = vmatpush1.msra.mxu0 %v1250_v7 }
 0x182   :  { %v2639_v16 = vsub.s32 %v3149_v51, %v3153_v32  ;;  %vm3155_vm14 = vcmp.eq.s32.totalorder %v2186_v25, 1  ;;  %vm3156_vm0 = vcmp.eq.s32.totalorder %v2190_v46, 1  ;;  %v2649_v59 = vsub.s32 %v3149_v51, %v3157_v0  ;;  %v3163_v46 = vld [vmem:[#allocation18_spill] sm:$0xff]  ;;  %v3178_v0 = vld [vmem:[#allocation81_spill] sm:$0xff] }
 0x183   :  { %v736_v11 = vsel %vm3155_vm14, %v3154_v31, %v480_v17  ;;  %v737_v23 = vsel %vm3156_vm0, %v3154_v31, %v481_v6  ;;  %v2653_v18 = vsub.s32 %v3150_v26, %v3153_v32  ;;  %vm3158_vm12 = vcmp.eq.s32.totalorder %v2186_v25, 16  ;;  %v2659_v53 = vpop.permute.xlu1 %713  ;;  %v3172_v6 = vld [vmem:[#allocation62_spill] sm:$0xff]  ;;  %v3175_v32 = vld [vmem:[#allocation52_spill] sm:$0xff] }
 0x184   :  { %v992_v55 = vsel %vm3158_vm12, %v870_v40, %v736_v11  ;;  %v993_v24 = vsel %vm801_vm4, %v870_v40, %v737_v23  ;;  %vm3159_vm2 = vcmp.eq.s32.totalorder %v2186_v25, 17  ;;  %vm796_vm3 = vcmp.eq.s32.totalorder %v3145_v15, 16  ;;  %v866_v57 = vpop.permute.xlu0 %865  ;;  %v3177_v11 = vld [vmem:[#allocation64_spill] sm:$0xff] }
 0x185   :  { %v1249_v52 = vsel %vm1057_vm9, %v2377_v61, %v993_v24  ;;  %v1248_v20 = vsel %vm3159_vm2, %v2377_v61, %v992_v55  ;;  %vm3161_vm0 = vcmp.eq.s32.totalorder %v2217_v62, 0  ;;  %vm3162_vm4 = vcmp.eq.s32.totalorder %v3140_v28, 0  ;;  %v3164_v61 = vld [vmem:[#allocation61_spill] sm:$0xff] }
 0x186   :  { %v478_v12 = vsel %vm3161_vm0, %v3160_v2, 0.0  ;;  %v479_v48 = vsel %vm3162_vm4, %v3160_v2, 0.0  ;;  %1338 = vmatprep.subr.mxu0 %v1249_v52  ;;  %v2679_v25 = vsub.s32 %v3149_v51, %v3163_v46  ;;  %vm314_vm2 = vcmp.eq.s32.totalorder %v2639_v16, 0  ;;  %v3184_v46 = vld [vmem:[#allocation77_spill] sm:$0xff] }
 0x187   :  { %v734_v14 = vsel %vm542_vm11, %v3164_v61, %v478_v12  ;;  %v735_v36 = vsel %vm543_vm13, %v3164_v61, %v479_v48  ;;  %1339 = vmatpush1.msra.mxu0 %v1248_v20  ;;  %vm310_vm4 = vcmp.eq.s32.totalorder %v2649_v59, 0  ;;  %vm315_vm9 = vcmp.eq.s32.totalorder %v2653_v18, 0  ;;  %v3181_v20 = vld [vmem:[#allocation56_spill] sm:$0xff]  ;;  %v3182_v12 = vld [vmem:[#allocation53_spill] sm:$0xff] }
 0x188   :  { %vm602_vm12 = vcmp.eq.s32.totalorder %v2639_v16, 1  ;;  %v990_v54 = vsel %vm798_vm1, %v866_v57, %v734_v14  ;;  %v991_v30 = vsel %vm799_vm8, %v866_v57, %v735_v36  ;;  %vm603_vm14 = vcmp.eq.s32.totalorder %v2653_v18, 1  ;;  %v2717_v62 = vpop.permute.xlu1 %1229  ;;  %v862_v22 = vpop.permute.xlu0 %861  ;;  %v3186_v57 = vld [vmem:[#allocation80_spill] sm:$0xff] }
 0x189   :  { %vm858_vm0 = vcmp.eq.s32.totalorder %v2639_v16, 16  ;;  %v1247_v9 = vsel %vm1055_vm5, %v2395_v47, %v991_v30  ;;  %v1246_v5 = vsel %vm1054_vm7, %v2395_v47, %v990_v54  ;;  %v476_v1 = vsel %vm252_vm6, %v3166_v43, 0.0  ;;  %v3169_v47 = vld [vmem:[#allocation76_spill] sm:$0xff] }
 0x18a   :  { %vm3167_vm1 = vcmp.eq.s32.totalorder %v3146_v39, 0  ;;  %vm306_vm8 = vcmp.eq.s32.totalorder %v2619_v49, 0  ;;  %v539_v42 = vsel %vm315_vm9, %v3168_v3, 0.0  ;;  %vm859_vm13 = vcmp.eq.s32.totalorder %v2653_v18, 16  ;;  %1340 = vmatprep.subr.mxu0 %v1247_v9  ;;  %v3187_v9 = vld [vmem:[#allocation54_spill] sm:$0xff] }
 0x18b   :  { %v477_v34 = vsel %vm3167_vm1, %v3166_v43, 0.0  ;;  %vm854_vm5 = vcmp.eq.s32.totalorder %v2649_v59, 16  ;;  %vm595_vm11 = vcmp.eq.s32.totalorder %v2623_v4, 1  ;;  %vm852_vm7 = vcmp.eq.s32.totalorder %v3169_v47, 16  ;;  %1341 = vmatpush1.msra.mxu0 %v1246_v5 }
 0x18c   :  { %v538_v28 = vsel %vm314_vm2, %v3168_v3, 0.0  ;;  %v732_v10 = vsel %vm540_vm10, %v3170_v13, %v476_v1  ;;  %v733_v35 = vsel %vm541_vm15, %v3170_v13, %v477_v34  ;;  %v795_v29 = vsel %vm603_vm14, %v2419_v50, %v539_v42  ;;  %v3191_v1 = vld [vmem:[#allocation68_spill] sm:$0xff]  ;;  %v3193_v42 = vld [vmem:[#allocation82_spill] sm:$0xff]  ;;  %v3195_v13 = vld [vmem:[#allocation89_spill] sm:$0xff] }
 0x18d   :  { %vm594_vm6 = vcmp.eq.s32.totalorder %v2619_v49, 1  ;;  %vm851_vm9 = vcmp.eq.s32.totalorder %v2623_v4, 16  ;;  %v794_v63 = vsel %vm602_vm12, %v2419_v50, %v538_v28  ;;  %v1051_v7 = vsel %vm859_vm13, %v2446_v37, %v795_v29  ;;  %v710_v31 = vpop.permute.xlu1 %709  ;;  %v3194_v28 = vld [vmem:[#allocation66_spill] sm:$0xff] }
 0x18e   :  { %v988_v58 = vsel %vm796_vm3, %v862_v22, %v732_v10  ;;  %vm3171_vm10 = vcmp.eq.s32.totalorder %v3146_v39, 16  ;;  %v1050_v17 = vsel %vm858_vm0, %v2446_v37, %v794_v63  ;;  %vm3173_vm12 = vcmp.eq.s32.totalorder %v3146_v39, 17  ;;  %v3176_v37 = vld [vmem:[#allocation59_spill] sm:$0xff] }
 0x18f   :  { %v989_v38 = vsel %vm3171_vm10, %v862_v22, %v733_v35  ;;  %vm3174_vm13 = vcmp.eq.s32.totalorder %v3145_v15, 17  ;;  %vm853_vm3 = vcmp.eq.s32.totalorder %v3175_v32, 16  ;;  %vm592_vm1 = vcmp.eq.s32.totalorder %v2635_v56, 1  ;;  %v974_v15 = vpop.permute.xlu0 %973  ;;  %v3196_v22 = vld [vmem:[#allocation13_spill] sm:$0xff] }
 0x190   :  { %v1245_v50 = vsel %vm3173_vm12, %v3172_v6, %v989_v38  ;;  %v1244_v19 = vsel %vm3174_vm13, %v3172_v6, %v988_v58  ;;  %vm312_vm10 = vcmp.eq.s32.totalorder %v2679_v25, 0  ;;  %vm600_vm14 = vcmp.eq.s32.totalorder %v2679_v25, 1  ;;  %v3197_v58 = vld [vmem:[#allocation37_spill] sm:$0xff]  ;;  %v3199_v6 = vld [vmem:[#allocation51_spill] sm:$0xff] }
 0x191   :  { %vm856_vm15 = vcmp.eq.s32.totalorder %v2679_v25, 16  ;;  %1342 = vmatprep.subr.mxu0 %v1245_v50  ;;  %vm1115_vm0 = vcmp.eq.s32.totalorder %v2653_v18, 17  ;;  %v536_v39 = vsel %vm312_vm10, %v3176_v37, 0.0  ;;  %vm1114_vm12 = vcmp.eq.s32.totalorder %v2639_v16, 17  ;;  %v3179_v18 = vld [vmem:[#allocation55_spill] sm:$0xff] }
 0x192   :  { %1343 = vmatpush1.msra.mxu0 %v1244_v19  ;;  %v1307_v23 = vsel %vm1115_vm0, %v3177_v11, %v1051_v7  ;;  %vm1109_vm13 = vcmp.eq.s32.totalorder %v3175_v32, 17  ;;  %v792_v40 = vsel %vm600_vm14, %v2466_v27, %v536_v39  ;;  %v1045_v55 = vsel %vm853_vm3, %v974_v15, %v3178_v0  ;;  %v3200_v0 = vld [vmem:[#allocation46_spill] sm:$0xff] }
 0x193   :  { %vm3180_vm2 = vcmp.eq.s32.totalorder %v3165_v41, 1  ;;  %1344 = vmatprep.subr.mxu0 %v1307_v23  ;;  %v1306_v52 = vsel %vm1114_vm12, %v3177_v11, %v1050_v17  ;;  %v534_v2 = vsel %vm310_vm4, %v3181_v20, 0.0  ;;  %v1048_v16 = vsel %vm856_vm15, %v2498_v21, %v792_v40 }
 0x194   :  { %v785_v24 = vsel %vm3180_vm2, %v710_v31, %v3179_v18  ;;  %1345 = vmatpush2.msra.mxu0 %v1306_v52  ;;  %vm1112_vm14 = vcmp.eq.s32.totalorder %v2679_v25, 17  ;;  %v1301_v27 = vsel %vm1109_vm13, %v2717_v62, %v1045_v55  ;;  %vm3183_vm3 = vcmp.eq.s32.totalorder %v2623_v4, 0  ;;  %v3201_v55 = vld [vmem:[#allocation84_spill] sm:$0xff]  ;;  %v3203_v52 = vld [vmem:[#allocation83_spill] sm:$0xff] }
 0x195   :  { %v531_v48 = vsel %vm3183_vm3, %v3182_v12, 0.0  ;;  %vm3185_vm2 = vcmp.eq.s32.totalorder %v2649_v59, 1  ;;  %1346 = vmatprep.subr.mxu0 %v2544_v60  ;;  %v1304_v14 = vsel %vm1112_vm14, %v2532_v8, %v1048_v16  ;;  %vm1110_vm4 = vcmp.eq.s32.totalorder %v2649_v59, 17  ;;  %v970_v8 = vpop.permute.xlu0 %969 }
 0x196   :  { %v790_v61 = vsel %vm3185_vm2, %v3184_v46, %v534_v2  ;;  %v530_v21 = vsel %vm306_vm8, %v3182_v12, 0.0  ;;  %v787_v36 = vsel %vm595_vm11, %v2659_v53, %v531_v48  ;;  %v1044_v60 = vsel %vm852_vm7, %v974_v15, %v3186_v57  ;;  %1347 = vmatpush2.msra.mxu0 %v1304_v14  ;;  %v3204_v12 = vld [vmem:[#allocation11_spill] sm:$0xff]  ;;  %v3205_v46 = vld [vmem:[#allocation12_spill] sm:$0xff] }
 0x197   :  { %v1046_v25 = vsel %vm854_vm5, %v2569_v44, %v790_v61  ;;  %v786_v54 = vsel %vm594_vm6, %v2659_v53, %v530_v21  ;;  %v1043_v30 = vsel %vm851_vm9, %v970_v8, %v787_v36  ;;  %1348 = vmatprep.subr.mxu0 %v2615_v45  ;;  %v966_v44 = vpop.permute.xlu1 %965  ;;  %vm1108_vm11 = vcmp.eq.s32.totalorder %v3169_v47, 17  ;;  %v3206_v21 = vld [vmem:[#allocation42_spill] sm:$0xff]  ;;  %v3208_v57 = vld [vmem:[#allocation48_spill] sm:$0xff] }
 0x198   :  { %v1302_v59 = vsel %vm1110_vm4, %v2607_v33, %v1046_v25  ;;  %vm3188_vm8 = vcmp.eq.s32.totalorder %v2635_v56, 0  ;;  %vm3189_vm5 = vcmp.eq.s32.totalorder %v2619_v49, 16  ;;  %vm3190_vm7 = vcmp.eq.s32.totalorder %v3165_v41, 16  ;;  %v3207_v25 = vld [vmem:[#allocation49_spill] sm:$0xff] }
 0x199   :  { %v528_v5 = vsel %vm3188_vm8, %v3187_v9, 0.0  ;;  %v1042_v43 = vsel %vm3189_vm5, %v970_v8, %v786_v54  ;;  %v1041_v53 = vsel %vm3190_vm7, %v966_v44, %v785_v24  ;;  %1349 = vmatpush2.msra.mxu0 %v1302_v59  ;;  %vm1105_vm6 = vcmp.eq.s32.totalorder %v3165_v41, 17  ;;  %v2828_v47 = vpop.permute.xlu0 %953  ;;  %v3202_v24 = vld [vmem:[#allocation79_spill] sm:$0xff]  ;;  %v3210_v59 = vld [vmem:[#allocation69_spill] sm:$0xff] }
 0x19a   :  { %v784_v45 = vsel %vm592_vm1, %v710_v31, %v528_v5  ;;  %1350 = vmatprep.subr.mxu0 %v1301_v27  ;;  %v1300_v33 = vsel %vm1108_vm11, %v2717_v62, %v1044_v60  ;;  %vm1107_vm9 = vcmp.eq.s32.totalorder %v2623_v4, 17  ;;  %v1297_v34 = vsel %vm1105_vm6, %v3191_v1, %v1041_v53  ;;  %v3209_v54 = vld [vmem:[#allocation47_spill] sm:$0xff]  ;;  %v3211_v5 = vld [vmem:[#allocation86_spill] sm:$0xff] }
 0x19b   :  { %vm3192_vm15 = vcmp.eq.s32.totalorder %v2635_v56, 16  ;;  %1351 = vmatpush2.msra.mxu0 %v1300_v33  ;;  %vm843_vm10 = vcmp.eq.s32.totalorder %v3193_v42, 16  ;;  %v1299_v41 = vsel %vm1107_vm9, %v3194_v28, %v1043_v30  ;;  %vm1106_vm0 = vcmp.eq.s32.totalorder %v2619_v49, 17  ;;  %v706_v62 = vpop.permute.xlu1 %705 }
 0x19c   :  { %v1040_v3 = vsel %vm3192_vm15, %v966_v44, %v784_v45  ;;  %v2834_v10 = vsel %vm843_vm10, %v2828_v47, %v3195_v13  ;;  %1352 = vmatprep.subr.mxu0 %v1299_v41  ;;  %v1298_v4 = vsel %vm1106_vm0, %v3194_v28, %v1042_v43  ;;  %vm1104_vm1 = vcmp.eq.s32.totalorder %v2635_v56, 17  ;;  %v3198_v56 = vld [vmem:[#allocation95_spill] sm:$0xff] }
 0x19d   :  { %1353 = vmatpush2.msra.mxu0 %v1298_v4  ;;  %v1296_v35 = vsel %vm1104_vm1, %v3191_v1, %v1040_v3  ;;  %v2839_v29 = vpop.permute.xlu0 %949  ;;  %v206_v49 = vsub.s32 %v3149_v51, %v3196_v22  ;;  %v207_v63 = vsub.s32 %v3150_v26, %v3196_v22  ;;  %vm833_vm12 = vcmp.eq.s32.totalorder %v3197_v58, 16  ;;  %v3212_v3 = vld [vmem:[#allocation9_spill] sm:$0xff]  ;;  %v3213_v13 = vld [vmem:[#allocation43_spill] sm:$0xff] }
 0x19e   :  { %1354 = vmatprep.subr.mxu0 %v1297_v34  ;;  %vm845_vm7 = vcmp.eq.s32.totalorder %v3200_v0, 16  ;;  %vm844_vm6 = vcmp.eq.s32.totalorder %v3202_v24, 16  ;;  %vm1101_vm9 = vcmp.eq.s32.totalorder %v3200_v0, 17  ;;  %vm1100_vm15 = vcmp.eq.s32.totalorder %v3202_v24, 17 }
 0x19f   :  { %1355 = vmatpush2.msra.mxu0 %v1296_v35  ;;  %v962_v7 = vpop.permute.xlu1 %961  ;;  %vm302_vm13 = vcmp.eq.s32.totalorder %v206_v49, 0  ;;  %vm303_vm14 = vcmp.eq.s32.totalorder %v207_v63, 0  ;;  %vm590_vm3 = vcmp.eq.s32.totalorder %v206_v49, 1  ;;  %vm591_vm2 = vcmp.eq.s32.totalorder %v207_v63, 1 }
 0x1a0   :  { %v526_v50 = vsel %vm302_vm13, %v3199_v6, 0.0  ;;  %v527_v19 = vsel %vm303_vm14, %v3199_v6, 0.0  ;;  %vm846_vm4 = vcmp.eq.s32.totalorder %v206_v49, 16  ;;  %vm847_vm11 = vcmp.eq.s32.totalorder %v207_v63, 16 }
 0x1a1   :  { %v2846_v38 = vpop.permute.xlu0 %933  ;;  %v782_v32 = vsel %vm590_vm3, %v706_v62, %v526_v50  ;;  %v783_v37 = vsel %vm591_vm2, %v706_v62, %v527_v19  ;;  %vm1103_vm8 = vcmp.eq.s32.totalorder %v207_v63, 17  ;;  %vm1102_vm5 = vcmp.eq.s32.totalorder %v206_v49, 17  ;;  %v3214_v63 = vld [vmem:[#allocation70_spill] sm:$0xff]  ;;  %v3215_v50 = vld [vmem:[#allocation40_spill] sm:$0xff]  ;;  %v3216_v19 = vld [vmem:[#allocation45_spill] sm:$0xff] }
 0x1a2   :  { %v2850_v17 = vsel %vm833_vm12, %v2846_v38, %v3198_v56  ;;  %v1038_v39 = vsel %vm846_vm4, %v962_v7, %v782_v32  ;;  %v1039_v15 = vsel %vm847_vm11, %v962_v7, %v783_v37  ;;  %v202_v48 = vsub.s32 %v3149_v51, %v3204_v12  ;;  %v3217_v37 = vld [vmem:[#allocation10_spill] sm:$0xff] }
 0x1a3   :  { %v1218_v31 = vpop.permute.xlu1 %1217  ;;  %v200_v61 = vsub.s32 %v3149_v51, %v3205_v46  ;;  %vm585_vm10 = vcmp.eq.s32.totalorder %v3206_v21, 1  ;;  %vm841_vm12 = vcmp.eq.s32.totalorder %v3206_v21, 16  ;;  %vm1097_vm14 = vcmp.eq.s32.totalorder %v3206_v21, 17 }
 0x1a4   :  { %v1295_v11 = vsel %vm1103_vm8, %v1218_v31, %v1039_v15  ;;  %v1294_v23 = vsel %vm1102_vm5, %v1218_v31, %v1038_v39  ;;  %vm298_vm0 = vcmp.eq.s32.totalorder %v202_v48, 0  ;;  %vm586_vm3 = vcmp.eq.s32.totalorder %v202_v48, 1 }
 0x1a5   :  { %1356 = vmatprep.subr.mxu0 %v1295_v11  ;;  %vm296_vm1 = vcmp.eq.s32.totalorder %v200_v61, 0  ;;  %vm584_vm13 = vcmp.eq.s32.totalorder %v200_v61, 1  ;;  %v522_v30 = vsel %vm298_vm0, %v3209_v54, 0.0  ;;  %vm842_vm2 = vcmp.eq.s32.totalorder %v202_v48, 16  ;;  %v3218_v11 = vld [vmem:[#allocation44_spill] sm:$0xff] }
 0x1a6   :  { %1357 = vmatpush2.msra.mxu0 %v1294_v23  ;;  %v520_v60 = vsel %vm296_vm1, %v3208_v57, 0.0  ;;  %v778_v43 = vsel %vm586_vm3, %v3211_v5, %v522_v30  ;;  %vm1099_vm4 = vcmp.eq.s32.totalorder %v3193_v42, 17  ;;  %vm1098_vm11 = vcmp.eq.s32.totalorder %v202_v48, 17  ;;  %v3222_v48 = vld [vmem:[#allocation41_spill] sm:$0xff] }
 0x1a7   :  { %v958_v40 = vpop.permute.xlu1 %957  ;;  %v1034_v53 = vsel %vm842_vm2, %v2828_v47, %v778_v43  ;;  %vm840_vm8 = vcmp.eq.s32.totalorder %v200_v61, 16  ;;  %vm1096_vm5 = vcmp.eq.s32.totalorder %v200_v61, 17  ;;  %v198_v28 = vsub.s32 %v3149_v51, %v3212_v3  ;;  %v3223_v61 = vld [vmem:[#allocation92_spill] sm:$0xff] }
 0x1a8   :  { %v1037_v18 = vsel %vm845_vm7, %v958_v40, %v3201_v55  ;;  %v1036_v20 = vsel %vm844_vm6, %v958_v40, %v3203_v52  ;;  %v199_v41 = vsub.s32 %v3150_v26, %v3212_v3  ;;  %v196_v39 = vsub.s32 %v3149_v51, %v3217_v37  ;;  %v3219_v52 = vld [vmem:[#allocation8_spill] sm:$0xff] }
 0x1a9   :  { %vm294_vm7 = vcmp.eq.s32.totalorder %v198_v28, 0 }
 0x1aa   :  { %vm295_vm6 = vcmp.eq.s32.totalorder %v199_v41, 0  ;;  %vm839_vm0 = vcmp.eq.s32.totalorder %v199_v41, 16  ;;  %vm1095_vm1 = vcmp.eq.s32.totalorder %v199_v41, 17  ;;  %vm292_vm3 = vcmp.eq.s32.totalorder %v196_v39, 0 }
 0x1ab   :  { %v1214_v2 = vpop.permute.xlu1 %1213  ;;  %v519_v4 = vsel %vm295_vm6, %v3213_v13, 0.0  ;;  %v516_v23 = vsel %vm292_vm3, %v3218_v11, 0.0  ;;  %vm580_vm2 = vcmp.eq.s32.totalorder %v196_v39, 1  ;;  %vm1089_vm3 = vcmp.eq.s32.totalorder %v3197_v58, 17 }
 0x1ac   :  { %v1293_v16 = vsel %vm1101_vm9, %v1214_v2, %v1037_v18  ;;  %v1292_v27 = vsel %vm1100_vm15, %v1214_v2, %v1036_v20  ;;  %vm582_vm9 = vcmp.eq.s32.totalorder %v198_v28, 1  ;;  %vm583_vm15 = vcmp.eq.s32.totalorder %v199_v41, 1  ;;  %v3220_v2 = vld [vmem:[#allocation85_spill] sm:$0xff] }
 0x1ad   :  { %1358 = vmatprep.subr.mxu0 %v1293_v16  ;;  %v194_v20 = vsub.s32 %v3149_v51, %v3219_v52 }
 0x1ae   :  { %1359 = vmatpush2.msra.mxu0 %v1292_v27  ;;  %v3221_v27 = vld [vmem:[#allocation93_spill] sm:$0xff] }
 0x1af   :  { %vm578_vm6 = vcmp.eq.s32.totalorder %v194_v20, 1 }
 0x1b0   :  { %v694_v14 = vpop.permute.xlu1 %693 }
 0x1b1   :  { %v777_v36 = vsel %vm585_vm10, %v694_v14, %v3207_v25  ;;  %v776_v44 = vsel %vm584_vm13, %v694_v14, %v520_v60  ;;  %vm838_vm10 = vcmp.eq.s32.totalorder %v198_v28, 16  ;;  %vm581_vm13 = vcmp.eq.s32.totalorder %v3215_v50, 1 }
 0x1b2   :  { %v1033_v8 = vsel %vm841_vm12, %v2839_v29, %v777_v36  ;;  %v1032_v34 = vsel %vm840_vm8, %v2839_v29, %v776_v44  ;;  %vm1094_vm12 = vcmp.eq.s32.totalorder %v198_v28, 17  ;;  %vm1092_vm8 = vcmp.eq.s32.totalorder %v196_v39, 17  ;;  %v3224_v36 = vld [vmem:[#allocation6_spill] sm:$0xff] }
 0x1b3   :  { %v1289_v9 = vsel %vm1097_vm14, %v3210_v59, %v1033_v8  ;;  %v1288_v47 = vsel %vm1096_vm5, %v3210_v59, %v1032_v34  ;;  %vm837_vm14 = vcmp.eq.s32.totalorder %v3215_v50, 16  ;;  %vm835_vm5 = vcmp.eq.s32.totalorder %v3220_v2, 16  ;;  %v3225_v44 = vld [vmem:[#allocation38_spill] sm:$0xff] }
 0x1b4   :  { %v191_v57 = vsub.s32 %v3150_v26, %v3224_v36  ;;  %v190_v54 = vsub.s32 %v3149_v51, %v3224_v36 }
 0x1b5   :  { %v1210_v45 = vpop.permute.xlu1 %1209 }
 0x1b6   :  { %v1291_v33 = vsel %vm1099_vm4, %v1210_v45, %v2834_v10  ;;  %v1290_v1 = vsel %vm1098_vm11, %v1210_v45, %v1034_v53  ;;  %v518_v10 = vsel %vm294_vm7, %v3213_v13, 0.0  ;;  %vm836_vm4 = vcmp.eq.s32.totalorder %v196_v39, 16  ;;  %v3226_v45 = vld [vmem:[#allocation91_spill] sm:$0xff] }
 0x1b7   :  { %1360 = vmatprep.subr.mxu0 %v1291_v33  ;;  %vm1093_vm11 = vcmp.eq.s32.totalorder %v3215_v50, 17  ;;  %vm290_vm7 = vcmp.eq.s32.totalorder %v194_v20, 0  ;;  %v3227_v33 = vld [vmem:[#allocation94_spill] sm:$0xff]  ;;  %v1310_v50 = vld [vmem:[%s2926_s2] sm:$0xff] }
 0x1b8   :  { %1361 = vmatpush2.msra.mxu0 %v1290_v1  ;;  %v514_v46 = vsel %vm290_vm7, %v3222_v48, 0.0 }
 0x1b9   :  { %1362 = vmatprep.subr.mxu0 %v1289_v9  ;;  %v770_v14 = vsel %vm578_vm6, %v3223_v61, %v514_v46  ;;  %v930_v9 = vpop.permute.xlu0 %929 }
 0x1ba   :  { %v690_v42 = vpop.permute.xlu1 %689  ;;  %1363 = vmatpush2.msra.mxu0 %v1288_v47 }
 0x1bb   :  { %v774_v62 = vsel %vm582_vm9, %v690_v42, %v518_v10  ;;  %v775_v35 = vsel %vm583_vm15, %v690_v42, %v519_v4  ;;  %vm834_vm9 = vcmp.eq.s32.totalorder %v194_v20, 16  ;;  %vm1091_vm15 = vcmp.eq.s32.totalorder %v3220_v2, 17 }
 0x1bd   :  { %v1186_v34 = vpop.permute.xlu0 %1185 }
 0x1bf   :  { %v946_v29 = vpop.permute.xlu1 %945 }
 0x1c0   :  { %v1030_v22 = vsel %vm838_vm10, %v946_v29, %v774_v62  ;;  %v1031_v49 = vsel %vm839_vm0, %v946_v29, %v775_v35  ;;  %vm1090_vm10 = vcmp.eq.s32.totalorder %v194_v20, 17  ;;  %vm287_vm0 = vcmp.eq.s32.totalorder %v191_v57, 0 }
 0x1c1   :  { %v1287_v7 = vsel %vm1095_vm1, %v3214_v63, %v1031_v49  ;;  %v1286_v56 = vsel %vm1094_vm12, %v3214_v63, %v1030_v22  ;;  %vm286_vm1 = vcmp.eq.s32.totalorder %v190_v54, 0  ;;  %v511_v59 = vsel %vm287_vm0, %v3225_v44, 0.0 }
 0x1c2   :  { %1364 = vmatprep.subr.mxu0 %v1287_v7  ;;  %vm575_vm12 = vcmp.eq.s32.totalorder %v191_v57, 1  ;;  %v510_v5 = vsel %vm286_vm1, %v3225_v44, 0.0 }
 0x1c3   :  { %1365 = vmatpush2.msra.mxu0 %v1286_v56 }
 0x1c4   :  { %v686_v6 = vpop.permute.xlu1 %685 }
 0x1c5   :  { %v773_v32 = vsel %vm581_vm13, %v686_v6, %v3216_v19  ;;  %v772_v40 = vsel %vm580_vm2, %v686_v6, %v516_v23  ;;  %vm574_vm13 = vcmp.eq.s32.totalorder %v190_v54, 1  ;;  %vm831_vm2 = vcmp.eq.s32.totalorder %v191_v57, 16 }
 0x1c9   :  { %v942_v15 = vpop.permute.xlu1 %941 }
 0x1ca   :  { %v1029_v31 = vsel %vm837_vm14, %v942_v15, %v773_v32  ;;  %v1028_v0 = vsel %vm836_vm4, %v942_v15, %v772_v40  ;;  %vm832_vm14 = vcmp.eq.s32.totalorder %v3226_v45, 16  ;;  %vm1088_vm4 = vcmp.eq.s32.totalorder %v3226_v45, 17 }
 0x1cb   :  { %v1024_v1 = vsel %vm832_vm14, %v2846_v38, %v3227_v33  ;;  %v3228_v38 = vld [vmem:[#allocation7_spill] sm:$0xff] }
 0x1cc   :  { %v188_v4 = vsub.s32 %v3149_v51, %v3228_v38  ;;  %v189_v62 = vsub.s32 %v3150_v26, %v3228_v38 }
 0x1ce   :  { %v1198_v55 = vpop.permute.xlu1 %1197  ;;  %vm284_vm7 = vcmp.eq.s32.totalorder %v188_v4, 0  ;;  %vm285_vm6 = vcmp.eq.s32.totalorder %v189_v62, 0  ;;  %vm829_vm0 = vcmp.eq.s32.totalorder %v189_v62, 16  ;;  %vm1085_vm1 = vcmp.eq.s32.totalorder %v189_v62, 17 }
 0x1cf   :  { %v1285_v18 = vsel %vm1093_vm11, %v1198_v55, %v1029_v31  ;;  %v1284_v24 = vsel %vm1092_vm8, %v1198_v55, %v1028_v0  ;;  %vm830_vm11 = vcmp.eq.s32.totalorder %v190_v54, 16  ;;  %vm1087_vm8 = vcmp.eq.s32.totalorder %v191_v57, 17 }
 0x1d0   :  { %1366 = vmatprep.subr.mxu0 %v1285_v18 }
 0x1d1   :  { %1367 = vmatpush2.msra.mxu0 %v1284_v24 }
 0x1d3   :  { %v938_v16 = vpop.permute.xlu1 %937 }
 0x1d4   :  { %v1027_v12 = vsel %vm835_vm5, %v938_v16, %v3221_v27  ;;  %v1026_v21 = vsel %vm834_vm9, %v938_v16, %v770_v14  ;;  %vm1086_vm5 = vcmp.eq.s32.totalorder %v190_v54, 17  ;;  %vm572_vm9 = vcmp.eq.s32.totalorder %v188_v4, 1 }
 0x1d8   :  { %v1194_v25 = vpop.permute.xlu1 %1193 }
 0x1d9   :  { %v1283_v60 = vsel %vm1091_vm15, %v1194_v25, %v1027_v12  ;;  %v1282_v8 = vsel %vm1090_vm10, %v1194_v25, %v1026_v21  ;;  %vm573_vm15 = vcmp.eq.s32.totalorder %v189_v62, 1  ;;  %vm828_vm10 = vcmp.eq.s32.totalorder %v188_v4, 16 }
 0x1da   :  { %1368 = vmatprep.subr.mxu0 %v1283_v60 }
 0x1db   :  { %1369 = vmatpush2.msra.mxu0 %v1282_v8 }
 0x1dd   :  { %v674_v30 = vpop.permute.xlu1 %673 }
 0x1de   :  { %v767_v43 = vsel %vm575_vm12, %v674_v30, %v511_v59  ;;  %v766_v53 = vsel %vm574_vm13, %v674_v30, %v510_v5  ;;  %vm1084_vm12 = vcmp.eq.s32.totalorder %v188_v4, 17 }
 0x1df   :  { %v1023_v28 = vsel %vm831_vm2, %v930_v9, %v767_v43  ;;  %v1022_v42 = vsel %vm830_vm11, %v930_v9, %v766_v53 }
 0x1e0   :  { %v1279_v13 = vsel %vm1087_vm8, %v1186_v34, %v1023_v28  ;;  %v1278_v58 = vsel %vm1086_vm5, %v1186_v34, %v1022_v42 }
 0x1e2   :  { %v1190_v3 = vpop.permute.xlu1 %1189 }
 0x1e3   :  { %v1281_v41 = vsel %vm1089_vm3, %v1190_v3, %v2850_v17  ;;  %v1280_v47 = vsel %vm1088_vm4, %v1190_v3, %v1024_v1  ;;  %v3229_v17 = vld [vmem:[#allocation39_spill] sm:$0xff] }
 0x1e4   :  { %1370 = vmatprep.subr.mxu0 %v1281_v41  ;;  %v508_v29 = vsel %vm284_vm7, %v3229_v17, 0.0  ;;  %v509_v22 = vsel %vm285_vm6, %v3229_v17, 0.0 }
 0x1e5   :  { %1371 = vmatpush2.msra.mxu0 %v1280_v47 }
 0x1e6   :  { %1372 = vmatprep.subr.mxu0 %v1279_v13 }
 0x1e7   :  { %v670_v10 = vpop.permute.xlu1 %669  ;;  %1373 = vmatpush2.msra.mxu0 %v1278_v58 }
 0x1e8   :  { %v764_v49 = vsel %vm572_vm9, %v670_v10, %v508_v29  ;;  %v765_v63 = vsel %vm573_vm15, %v670_v10, %v509_v22 }
 0x1ec   :  { %v926_v35 = vpop.permute.xlu1 %925 }
 0x1ed   :  { %v1020_v7 = vsel %vm828_vm10, %v926_v35, %v764_v49  ;;  %v1021_v56 = vsel %vm829_vm0, %v926_v35, %v765_v63 }
 0x1f1   :  { %v1182_v6 = vpop.permute.xlu1 %1181 }
 0x1f2   :  { %v1277_v51 = vsel %vm1085_vm1, %v1182_v6, %v1021_v56  ;;  %v1276_v26 = vsel %vm1084_vm12, %v1182_v6, %v1020_v7 }
 0x1f3   :  { %1374 = vmatprep.subr.mxu0 %v1277_v51 }
 0x1f4   :  { %1375 = vmatpush2.msra.mxu0 %v1276_v26 }
 0x1f5   :  { %1377 = vmatmul.mubr.f32.vlgmr.msra.gmra.mxu0 %v1310_v50 }
 0x2b5   :  { %v1378_v19 = vpop.f32.mrf.mxu0 }
 0x2b6   :  { %1385 = vst [vmem:[#allocation2] sm:$0xff] %v1378_v19 }
 0x2b7   :  { %v1380_v32 = vpop.f32.mrf.mxu0 }
 0x2b8   :  { %1386 = vst [vmem:[#allocation2 + $0x8] sm:$0xff] %v1380_v32 }
 0x2b9   :  { %1457 = shalt.err (!%p1454_p4)
}
 0x2ba   :  { %1396 = dma.vmem_to_hbm [thread:$0]  %s1394_s8, 256, %s2927_s3, [#allocation3]  }
 0x2bb   :  { %1466 = dma.done.wait [#allocation3], 256  }
 0x2bc   :  { %1467 = vsyncadd [#allocation3], 4294967040 }
 0x2bd   :  { %1400 = vsyncpa [#allocation3], 1 }

</bundles_post_ra>
